<compile_context>
chip_gen: v7x
topology: tpu7x:2x2x1
jax: 0.10.0
libtpu: 0.0.40
codegen_flags: <defaults>
</compile_context>

<pallas_src>
import jax
import jax.numpy as jnp
from jax.experimental import pallas as pl
from jax.experimental.pallas import tpu as pltpu

EPS = 1e-5
_HIGH = jax.lax.Precision.HIGHEST


def mlp_output_kernel(hf_ref, p_ref, out_ref):
    # hf_ref : (N, H*H)          f32  flattened activations
    # p_ref  : (8 + H + H*H, H)  f32  packed parameter slab (see _pack_params)
    # out_ref: (N, C)            f32
    H = p_ref.shape[1]
    C = out_ref.shape[1]

    # Static, sublane-aligned views into the packed slab (no extra DMAs).
    g0 = p_ref[0:1, :]                    # (1, H)  BN0 gamma
    be0 = p_ref[1:2, :]                   # (1, H)  BN0 beta
    b0 = p_ref[2:3, :]                    # (1, H)  Linear0 bias (broadcast row)
    b1 = p_ref[3:4, :C]                   # (1, C)  Linear1 bias
    g1 = p_ref[4:5, :C]                   # (1, C)  BN1 gamma
    be1 = p_ref[5:6, :C]                  # (1, C)  BN1 beta
    w1 = p_ref[8:8 + H, :]                # (H, H)  Linear1 weight, cols >= C zero-padded
    w0b = p_ref[8 + H:, :]                # (H*H, H) block-diagonal kron(I_H, w0)

    # ---- Linear(H -> 1) over the feature axis, on the MXU ----
    # (N, H*H) @ (H*H, H) -> (N, H); column r of the result is <h[n, r, :], w0>.
    z = jnp.dot(hf_ref[...], w0b, precision=_HIGH,
                preferred_element_type=jnp.float32) + b0              # (N, H)

    # ---- BatchNorm1d(H), training mode (batch stats, biased var) + ReLU ----
    mu0 = jnp.mean(z, axis=0, keepdims=True)                          # (1, H)
    zc = z - mu0
    var0 = jnp.mean(zc * zc, axis=0, keepdims=True)                   # (1, H)
    scale0 = g0 * jax.lax.rsqrt(var0 + EPS)                           # EUP rsqrt
    z = jnp.maximum(zc * scale0 + be0, 0.0)                           # one FMA sweep + ReLU

    # ---- Linear(H -> C) on the MXU (H-padded columns, sliced back to C) ----
    y = jnp.dot(z, w1, precision=_HIGH,
                preferred_element_type=jnp.float32)[:, :C] + b1       # (N, C)

    # ---- BatchNorm1d(C), training mode + Sigmoid ----
    mu1 = jnp.mean(y, axis=0, keepdims=True)
    yc = y - mu1
    var1 = jnp.mean(yc * yc, axis=0, keepdims=True)
    scale1 = g1 * jax.lax.rsqrt(var1 + EPS)
    out_ref[...] = jax.nn.sigmoid(yc * scale1 + be1)


def _pack_params(params, H, C):
    """Pack all MLP_output parameters into one (8 + H + H*H, H) f32 slab."""
    w0, b0, g0, be0, w1, b1, g1, be1 = params
    f32 = jnp.float32

    def row(v, width):
        v = jnp.asarray(v, f32).reshape(1, -1)
        return jnp.pad(v, ((0, 0), (0, width - v.shape[1])))

    small = jnp.concatenate([
        row(g0, H),                                                   # 0: BN0 gamma
        row(be0, H),                                                  # 1: BN0 beta
        jnp.broadcast_to(jnp.asarray(b0, f32).reshape(1, 1), (1, H)), # 2: b0 broadcast
        row(b1, H),                                                   # 3: Linear1 bias (padded)
        row(g1, H),                                                   # 4: BN1 gamma   (padded)
        row(be1, H),                                                  # 5: BN1 beta    (padded)
        jnp.zeros((2, H), f32),                                       # 6-7: pad to full sublane tile
    ], axis=0)                                                        # (8, H)

    w1_pad = jnp.pad(jnp.asarray(w1, f32), ((0, 0), (0, H - C)))      # (H, H)
    # Block-diagonal lift of the Linear(H->1) weight so the feature-axis
    # contraction runs as a single lane-dense MXU matmul inside the kernel.
    w0_blk = jnp.kron(jnp.eye(H, dtype=f32),
                      jnp.asarray(w0, f32).reshape(H, 1))             # (H*H, H)

    return jnp.concatenate([small, w1_pad, w0_blk], axis=0)           # (8 + H + H*H, H)


def mlp_output(h, params):
    """h: (N, H, H) f32; params = (w0, b0, g0, be0, w1, b1, g1, be1) with
    w1 already transposed to (H, C). Returns (N, C) f32."""
    N, H = h.shape[0], h.shape[1]
    C = params[4].shape[1]

    h_flat = jnp.asarray(h, jnp.float32).reshape(N, H * H)  # layout plumbing only
    slab = _pack_params(params, H, C)

    vmem = pl.BlockSpec(memory_space=pltpu.MemorySpace.VMEM)
    return pl.pallas_call(
        mlp_output_kernel,
        out_shape=jax.ShapeDtypeStruct((N, C), jnp.float32),
        in_specs=[vmem, vmem],
        out_specs=vmem,
        # Single block: everything fits VMEM trivially at these shapes.  For
        # large N, switch to a grid over N (two-pass BN accumulation via
        # pl.when init/finalize) with dimension_semantics=("parallel",) so
        # v7x's 2 TensorCores share the batch, plus vmem_limit_bytes headroom.
    )(h_flat, slab)


def reference(h, params):
    """Pure-JAX mirror of the PyTorch module (training-mode BatchNorm)."""
    w0, b0, g0, be0, w1, b1, g1, be1 = params
    z = jnp.sum(h * w0[0], axis=-1) + b0[0, 0]
    mu0 = jnp.mean(z, axis=0, keepdims=True)
    var0 = jnp.mean((z - mu0) ** 2, axis=0, keepdims=True)
    z = (z - mu0) / jnp.sqrt(var0 + EPS) * g0 + be0
    z = jnp.maximum(z, 0.0)
    y = jnp.dot(z, w1, precision=_HIGH) + b1
    mu1 = jnp.mean(y, axis=0, keepdims=True)
    var1 = jnp.mean((y - mu1) ** 2, axis=0, keepdims=True)
    y = (y - mu1) / jnp.sqrt(var1 + EPS) * g1 + be1
    return jax.nn.sigmoid(y)


if __name__ == "__main__":
    N, H, C = 8, 32, 4          # batch, hidden_dim, output_dim

    key = jax.random.PRNGKey(0)
    k_h, k_w0, k_b0, k_w1, k_b1 = jax.random.split(key, 5)

    # Input: (N, H, H) so that Linear(H->1).squeeze() yields (N, H), as
    # required by BatchNorm1d(hidden_dim).
    h = jax.random.normal(k_h, (N, H, H), dtype=jnp.float32)

    # Deterministic parameter init (shapes follow nn.Linear / nn.BatchNorm1d;
    # w1 is stored pre-transposed as (H, C)).
    bound0 = 1.0 / (H ** 0.5)
    w0 = jax.random.uniform(k_w0, (1, H), jnp.float32, -bound0, bound0)   # Linear(H,1).weight
    b0 = jax.random.uniform(k_b0, (1, 1), jnp.float32, -bound0, bound0)   # Linear(H,1).bias
    w1 = jax.random.uniform(k_w1, (H, C), jnp.float32, -bound0, bound0)   # Linear(H,C).weight^T
    b1 = jax.random.uniform(k_b1, (1, C), jnp.float32, -bound0, bound0)   # Linear(H,C).bias
    g0, be0 = jnp.ones((1, H), jnp.float32), jnp.zeros((1, H), jnp.float32)  # BN(H) gamma/beta
    g1, be1 = jnp.ones((1, C), jnp.float32), jnp.zeros((1, C), jnp.float32)  # BN(C) gamma/beta

    params = (w0, b0, g0, be0, w1, b1, g1, be1)

    out = jax.block_until_ready(mlp_output(h, params))
    ref = jax.block_until_ready(reference(h, params))

    assert out.shape == (N, C)
    assert jnp.allclose(out, ref, atol=1e-5, rtol=1e-5), "mismatch vs JAX reference"
    print("KERNEL_OK")
</pallas_src>

<mosaic_0001>
module attributes {stable_mosaic.version = 11 : i64} {
  func.func @mlp_output_kernel(%arg0: memref<8x1024xf32, #tpu.memory_space<vmem>>, %arg1: memref<1064x32xf32, #tpu.memory_space<vmem>>, %arg2: memref<8x4xf32, #tpu.memory_space<vmem>>) attributes {dimension_semantics = [], scalar_prefetch = 0 : i64, scratch_operands = 0 : i64, tpu.core_type = #tpu.core_type<tc>} {
    %c0 = arith.constant 0 : index
    %c0_0 = arith.constant 0 : index
    %0 = vector.load %arg1[%c0, %c0_0] : memref<1064x32xf32, #tpu.memory_space<vmem>>, vector<1x32xf32>
    %c1 = arith.constant 1 : index
    %c0_1 = arith.constant 0 : index
    %1 = vector.load %arg1[%c1, %c0_1] : memref<1064x32xf32, #tpu.memory_space<vmem>>, vector<1x32xf32>
    %c2 = arith.constant 2 : index
    %c0_2 = arith.constant 0 : index
    %2 = vector.load %arg1[%c2, %c0_2] : memref<1064x32xf32, #tpu.memory_space<vmem>>, vector<1x32xf32>
    %c3 = arith.constant 3 : index
    %c0_3 = arith.constant 0 : index
    %3 = vector.load %arg1[%c3, %c0_3] : memref<1064x32xf32, #tpu.memory_space<vmem>>, vector<1x4xf32>
    %c4 = arith.constant 4 : index
    %c0_4 = arith.constant 0 : index
    %4 = vector.load %arg1[%c4, %c0_4] : memref<1064x32xf32, #tpu.memory_space<vmem>>, vector<1x4xf32>
    %c5 = arith.constant 5 : index
    %c0_5 = arith.constant 0 : index
    %5 = vector.load %arg1[%c5, %c0_5] : memref<1064x32xf32, #tpu.memory_space<vmem>>, vector<1x4xf32>
    %c8 = arith.constant 8 : index
    %c0_6 = arith.constant 0 : index
    %6 = vector.load %arg1[%c8, %c0_6] : memref<1064x32xf32, #tpu.memory_space<vmem>>, vector<32x32xf32>
    %c40 = arith.constant 40 : index
    %c0_7 = arith.constant 0 : index
    %7 = vector.load %arg1[%c40, %c0_7] : memref<1064x32xf32, #tpu.memory_space<vmem>>, vector<1024x32xf32>
    %c0_8 = arith.constant 0 : index
    %c0_9 = arith.constant 0 : index
    %8 = vector.load %arg0[%c0_8, %c0_9] : memref<8x1024xf32, #tpu.memory_space<vmem>>, vector<8x1024xf32>
    %cst = arith.constant dense<0.000000e+00> : vector<8x32xf32>
    %9 = tpu.matmul %8, %7, %cst {dimension_numbers = #tpu.dot_dimension_numbers<[1], [0], [0], [1], [0, 0, 1, 1], [], []>, precision = #tpu.contract_precision<fp32>} : vector<8x1024xf32>, vector<1024x32xf32>, vector<8x32xf32> -> vector<8x32xf32>
    %10 = vector.broadcast %2 : vector<1x32xf32> to vector<8x32xf32>
    %11 = arith.addf %9, %10 : vector<8x32xf32>
    %cst_10 = arith.constant dense<0.000000e+00> : vector<32xf32>
    %12 = vector.multi_reduction <add>, %11, %cst_10 [0] : vector<8x32xf32> to vector<32xf32>
    %13 = vector.shape_cast %12 : vector<32xf32> to vector<1x32xf32>
    %cst_11 = arith.constant 8.000000e+00 : f32
    %14 = vector.broadcast %cst_11 : f32 to vector<1x32xf32>
    %15 = arith.divf %13, %14 : vector<1x32xf32>
    %16 = vector.broadcast %15 : vector<1x32xf32> to vector<8x32xf32>
    %17 = arith.subf %11, %16 : vector<8x32xf32>
    %18 = arith.mulf %17, %17 : vector<8x32xf32>
    %cst_12 = arith.constant dense<0.000000e+00> : vector<32xf32>
    %19 = vector.multi_reduction <add>, %18, %cst_12 [0] : vector<8x32xf32> to vector<32xf32>
    %20 = vector.shape_cast %19 : vector<32xf32> to vector<1x32xf32>
    %cst_13 = arith.constant 8.000000e+00 : f32
    %21 = vector.broadcast %cst_13 : f32 to vector<1x32xf32>
    %22 = arith.divf %20, %21 : vector<1x32xf32>
    %cst_14 = arith.constant 9.99999974E-6 : f32
    %23 = vector.broadcast %cst_14 : f32 to vector<1x32xf32>
    %24 = arith.addf %22, %23 : vector<1x32xf32>
    %25 = math.rsqrt %24 : vector<1x32xf32>
    %26 = arith.mulf %0, %25 : vector<1x32xf32>
    %27 = vector.broadcast %26 : vector<1x32xf32> to vector<8x32xf32>
    %28 = arith.mulf %17, %27 : vector<8x32xf32>
    %29 = vector.broadcast %1 : vector<1x32xf32> to vector<8x32xf32>
    %30 = arith.addf %28, %29 : vector<8x32xf32>
    %cst_15 = arith.constant 0.000000e+00 : f32
    %31 = vector.broadcast %cst_15 : f32 to vector<8x32xf32>
    %32 = arith.maximumf %30, %31 : vector<8x32xf32>
    %cst_16 = arith.constant dense<0.000000e+00> : vector<8x32xf32>
    %33 = tpu.matmul %32, %6, %cst_16 {dimension_numbers = #tpu.dot_dimension_numbers<[1], [0], [0], [1], [0, 0, 1, 1], [], []>, precision = #tpu.contract_precision<fp32>} : vector<8x32xf32>, vector<32x32xf32>, vector<8x32xf32> -> vector<8x32xf32>
    %34 = vector.extract_strided_slice %33 {offsets = [0, 0], sizes = [8, 4], strides = [1, 1]} : vector<8x32xf32> to vector<8x4xf32>
    %35 = vector.broadcast %3 : vector<1x4xf32> to vector<8x4xf32>
    %36 = arith.addf %34, %35 : vector<8x4xf32>
    %cst_17 = arith.constant dense<0.000000e+00> : vector<4xf32>
    %37 = vector.multi_reduction <add>, %36, %cst_17 [0] : vector<8x4xf32> to vector<4xf32>
    %38 = vector.shape_cast %37 : vector<4xf32> to vector<1x4xf32>
    %cst_18 = arith.constant 8.000000e+00 : f32
    %39 = vector.broadcast %cst_18 : f32 to vector<1x4xf32>
    %40 = arith.divf %38, %39 : vector<1x4xf32>
    %41 = vector.broadcast %40 : vector<1x4xf32> to vector<8x4xf32>
    %42 = arith.subf %36, %41 : vector<8x4xf32>
    %43 = arith.mulf %42, %42 : vector<8x4xf32>
    %cst_19 = arith.constant dense<0.000000e+00> : vector<4xf32>
    %44 = vector.multi_reduction <add>, %43, %cst_19 [0] : vector<8x4xf32> to vector<4xf32>
    %45 = vector.shape_cast %44 : vector<4xf32> to vector<1x4xf32>
    %cst_20 = arith.constant 8.000000e+00 : f32
    %46 = vector.broadcast %cst_20 : f32 to vector<1x4xf32>
    %47 = arith.divf %45, %46 : vector<1x4xf32>
    %cst_21 = arith.constant 9.99999974E-6 : f32
    %48 = vector.broadcast %cst_21 : f32 to vector<1x4xf32>
    %49 = arith.addf %47, %48 : vector<1x4xf32>
    %50 = math.rsqrt %49 : vector<1x4xf32>
    %51 = arith.mulf %4, %50 : vector<1x4xf32>
    %52 = vector.broadcast %51 : vector<1x4xf32> to vector<8x4xf32>
    %53 = arith.mulf %42, %52 : vector<8x4xf32>
    %54 = vector.broadcast %5 : vector<1x4xf32> to vector<8x4xf32>
    %55 = arith.addf %53, %54 : vector<8x4xf32>
    %56 = arith.negf %55 : vector<8x4xf32>
    %57 = math.exp %56 : vector<8x4xf32>
    %cst_22 = arith.constant 1.000000e+00 : f32
    %58 = vector.broadcast %cst_22 : f32 to vector<8x4xf32>
    %59 = arith.addf %58, %57 : vector<8x4xf32>
    %60 = arith.divf %58, %59 : vector<8x4xf32>
    %c0_23 = arith.constant 0 : index
    %c0_24 = arith.constant 0 : index
    %61 = vector.load %arg2[%c0_23, %c0_24] : memref<8x4xf32, #tpu.memory_space<vmem>>, vector<8x4xf32>
    tpu.vector_store %arg2[%c0_23, %c0_24], %60 {strides = array<i32>} : memref<8x4xf32, #tpu.memory_space<vmem>>, vector<8x4xf32>,
    return
  }
}

</mosaic_0001>

<bundles_post_ra>
// kernel: tpu_custom_call.1
= control target key start
LH: loop header
LB: loop body
LE: loop exit
PB: predicated region body
PF: predicated region fallthrough
CT: control target
= control target key end

     0   :  { %vm5936_vm0 = vmmov 0   ;;  %vm3609_vm1 = vcmask 261120   ;;  %vm4136_vm2 = vcmask 31744   ;;  %s8297_s1 = inlined_call_operand.vmem [shape: f32[1064,32], index: 1, kind: input, shape index: {}]   ;;  %s8298_s0 = inlined_call_operand.vmem [shape: f32[8,1024], index: 0, kind: input, shape index: {}]   ;;  %s8299_s2 = inlined_call_operand.vmem [shape: f32[8,4], index: 2, kind: output, shape index: {}]  }
   0x1   :  { %v37_v0 = vld [vmem:[%s8297_s1 + $0xa8] sm:$0xff]  ;;  %v38_v1 = vld [vmem:[%s8297_s1 + $0xb0] sm:$0xff]  ;;  %v39_v7 = vld [vmem:[%s8297_s1 + $0xb8] sm:$0xff] }
   0x2   :  { %v21_v2 = vld [vmem:[%s8297_s1 + $0x28] sm:$0xff]  ;;  %v210_v3 = vand.u32 4294901760, %v37_v0  ;;  %v213_v4 = vand.u32 4294901760, %v38_v1  ;;  %v22_v5 = vld [vmem:[%s8297_s1 + $0x30] sm:$0xff]  ;;  %v40_v8 = vld [vmem:[%s8297_s1 + $0xc0] sm:$0xff]  ;;  %v216_v10 = vand.u32 4294901760, %v39_v7 }
   0x3   :  { %v162_v6 = vand.u32 4294901760, %v21_v2  ;;  %v165_v9 = vand.u32 4294901760, %v22_v5  ;;  %v219_v11 = vand.u32 4294901760, %v40_v8  ;;  %v23_v12 = vld [vmem:[%s8297_s1 + $0x38] sm:$0xff]  ;;  %v24_v13 = vld [vmem:[%s8297_s1 + $0x40] sm:$0xff]  ;;  %v41_v18 = vld [vmem:[%s8297_s1 + $0xc8] sm:$0xff] }
   0x4   :  { %v5977_v14 = vpack.c.bf16 %v213_v4, %v210_v3  ;;  %v168_v16 = vand.u32 4294901760, %v23_v12  ;;  %v171_v17 = vand.u32 4294901760, %v24_v13  ;;  %v42_v19 = vld [vmem:[%s8297_s1 + $0xd0] sm:$0xff]  ;;  %v25_v23 = vld [vmem:[%s8297_s1 + $0x48] sm:$0xff]  ;;  %v6000_v25 = vsub.f32 %v39_v7, %v216_v10  ;;  %v43_v37 = vld [vmem:[%s8297_s1 + $0xd8] sm:$0xff] }
   0x5   :  { %v5979_v15 = vsub.f32 %v21_v2, %v162_v6  ;;  %v5987_v20 = vpack.c.bf16 %v165_v9, %v162_v6  ;;  %v5989_v21 = vsub.f32 %v22_v5, %v165_v9  ;;  %v5991_v22 = vpack.c.bf16 %v219_v11, %v216_v10  ;;  %v26_v24 = vld [vmem:[%s8297_s1 + $0x50] sm:$0xff]  ;;  %v44_v42 = vld [vmem:[%s8297_s1 + $0xe0] sm:$0xff]  ;;  %v27_v55 = vld [vmem:[%s8297_s1 + $0x58] sm:$0xff] }
   0x6   :  { %5121 = vmatprep.subr.bf16.mxu0 %v5977_v14  ;;  %v6002_v26 = vsub.f32 %v40_v8, %v219_v11  ;;  %v6004_v27 = vpack.c.bf16 %v171_v17, %v168_v16  ;;  %v6006_v28 = vsub.f32 %v23_v12, %v168_v16  ;;  %v222_v29 = vand.u32 4294901760, %v41_v18  ;;  %v28_v56 = vld [vmem:[%s8297_s1 + $0x60] sm:$0xff]  ;;  %v45_v5 = vld [vmem:[%s8297_s1 + $0xe8] sm:$0xff]  ;;  %v46_v6 = vld [vmem:[%s8297_s1 + $0xf0] sm:$0xff] }
   0x7   :  { %5123 = vmatpush3.bf16.msra.mxu0 %v5987_v20  ;;  %v225_v30 = vand.u32 4294901760, %v42_v19  ;;  %v6009_v31 = vsub.f32 %v37_v0, %v210_v3  ;;  %v6011_v32 = vsub.f32 %v38_v1, %v213_v4  ;;  %v174_v33 = vand.u32 4294901760, %v25_v23  ;;  %v29_v11 = vld [vmem:[%s8297_s1 + $0x68] sm:$0xff] }
   0x8   :  { %5125 = vmatprep.subr.bf16.mxu0 %v5991_v22  ;;  %v177_v34 = vand.u32 4294901760, %v26_v24  ;;  %v8316_v35 = vand.u32 4294901760, %v5979_v15  ;;  %v8315_v36 = vand.u32 4294901760, %v5989_v21  ;;  %v6019_v38 = vsub.f32 %v24_v13, %v171_v17 }
   0x9   :  { %v6021_v39 = vpack.c.bf16 %v225_v30, %v222_v29  ;;  %v6023_v40 = vsub.f32 %v41_v18, %v222_v29  ;;  %v8321_v41 = vand.u32 4294901760, %v6009_v31  ;;  %v6029_v43 = vsub.f32 %v42_v19, %v225_v30  ;;  %v30_v29 = vld [vmem:[%s8297_s1 + $0x70] sm:$0xff] }
   0xa   :  { %v8318_v44 = vand.u32 4294901760, %v6011_v32  ;;  %v6032_v45 = vpack.c.bf16 %v177_v34, %v174_v33  ;;  %v6034_v46 = vsub.f32 %v25_v23, %v174_v33  ;;  %v277_v48 = vsub.f32 %v5979_v15, %v8316_v35 }
   0xb   :  { %5127 = vmatpush3.bf16.msra.mxu0 %v6004_v27  ;;  %v389_v47 = vsub.f32 %v6009_v31, %v8321_v41  ;;  %v284_v49 = vsub.f32 %v5989_v21, %v8315_v36  ;;  %v228_v50 = vand.u32 4294901760, %v43_v37  ;;  %v231_v52 = vand.u32 4294901760, %v44_v42 }
   0xc   :  { %5129 = vmatprep.subr.bf16.mxu0 %v6021_v39  ;;  %v396_v51 = vsub.f32 %v6011_v32, %v8318_v44  ;;  %v8313_v53 = vand.u32 4294901760, %v6000_v25  ;;  %v8312_v54 = vand.u32 4294901760, %v6002_v26  ;;  %v6058_v58 = vsub.f32 %v26_v24, %v177_v34 }
   0xd   :  { %v390_v57 = vand.u32 4294901760, %v389_v47  ;;  %v278_v59 = vand.u32 4294901760, %v277_v48  ;;  %v285_v60 = vand.u32 4294901760, %v284_v49  ;;  %v6060_v62 = vpack.c.bf16 %v231_v52, %v228_v50 }
   0xe   :  { %v397_v61 = vand.u32 4294901760, %v396_v51  ;;  %v6062_v63 = vsub.f32 %v43_v37, %v228_v50  ;;  %v403_v0 = vsub.f32 %v6000_v25, %v8313_v53  ;;  %v410_v2 = vsub.f32 %v6002_v26, %v8312_v54 }
   0xf   :  { %5131 = vmatpush3.bf16.msra.mxu0 %v6032_v45  ;;  %v5154_v1 = vpack.c.bf16 %v285_v60, %v278_v59  ;;  %v180_v3 = vand.u32 4294901760, %v27_v55  ;;  %v183_v4 = vand.u32 4294901760, %v28_v56  ;;  %v8311_v9 = vand.u32 4294901760, %v6006_v28 }
  0x10   :  { %v5152_v7 = vpack.c.bf16 %v397_v61, %v390_v57  ;;  %5133 = vmatprep.subr.bf16.mxu0 %v6060_v62  ;;  %v404_v8 = vand.u32 4294901760, %v403_v0  ;;  %v8308_v10 = vand.u32 4294901760, %v6019_v38  ;;  %v6083_v12 = vsub.f32 %v44_v42, %v231_v52  ;;  %v48_v57 = vld [vmem:[%s8297_s1 + $0x100] sm:$0xff] }
  0x11   :  { %v411_v13 = vand.u32 4294901760, %v410_v2  ;;  %v6085_v16 = vpack.c.bf16 %v183_v4, %v180_v3  ;;  %v6087_v17 = vsub.f32 %v27_v55, %v180_v3  ;;  %v291_v18 = vsub.f32 %v6006_v28, %v8311_v9 }
  0x12   :  { %5153 = vmatprep.subr.bf16.mxu1 %v5152_v7  ;;  %v298_v19 = vsub.f32 %v6019_v38, %v8308_v10  ;;  %v234_v23 = vand.u32 4294901760, %v45_v5  ;;  %v237_v24 = vand.u32 4294901760, %v46_v6  ;;  %v8306_v33 = vand.u32 4294901760, %v6023_v40 }
  0x13   :  { %5155 = vmatpush3.bf16.msra.mxu1 %v5154_v1  ;;  %v5156_v30 = vpack.c.bf16 %v411_v13, %v404_v8  ;;  %5135 = vmatpush3.bf16.msra.mxu0 %v6085_v16  ;;  %v8305_v34 = vand.u32 4294901760, %v6029_v43  ;;  %v186_v37 = vand.u32 4294901760, %v29_v11  ;;  %v6101_v42 = vsub.f32 %v28_v56, %v183_v4  ;;  %v47_v56 = vld [vmem:[%s8297_s1 + $0xf8] sm:$0xff] }
  0x14   :  { %v292_v47 = vand.u32 4294901760, %v291_v18  ;;  %v299_v48 = vand.u32 4294901760, %v298_v19  ;;  %v6103_v49 = vpack.c.bf16 %v237_v24, %v234_v23  ;;  %v6105_v50 = vsub.f32 %v45_v5, %v234_v23  ;;  %v31_v1 = vld [vmem:[%s8297_s1 + $0x78] sm:$0xff]  ;;  %v32_v18 = vld [vmem:[%s8297_s1 + $0x80] sm:$0xff] }
  0x15   :  { %5157 = vmatprep.subr.bf16.mxu1 %v5156_v30  ;;  %v417_v51 = vsub.f32 %v6023_v40, %v8306_v33  ;;  %v424_v52 = vsub.f32 %v6029_v43, %v8305_v34  ;;  %v189_v55 = vand.u32 4294901760, %v30_v29  ;;  %v6120_v60 = vsub.f32 %v46_v6, %v237_v24 }
  0x16   :  { %v5158_v59 = vpack.c.bf16 %v299_v48, %v292_v47  ;;  %5137 = vmatprep.subr.bf16.mxu0 %v6103_v49  ;;  %v8303_v61 = vand.u32 4294901760, %v6034_v46  ;;  %v8302_v0 = vand.u32 4294901760, %v6058_v58  ;;  %v6129_v5 = vsub.f32 %v29_v11, %v186_v37 }
  0x17   :  { %v418_v2 = vand.u32 4294901760, %v417_v51  ;;  %v425_v3 = vand.u32 4294901760, %v424_v52  ;;  %v6127_v4 = vpack.c.bf16 %v189_v55, %v186_v37  ;;  %v240_v8 = vand.u32 4294901760, %v47_v56 }
  0x18   :  { %5159 = vmatpush3.bf16.msra.mxu1 %v5158_v59  ;;  %v305_v6 = vsub.f32 %v6034_v46, %v8303_v61  ;;  %v312_v7 = vsub.f32 %v6058_v58, %v8302_v0  ;;  %v243_v13 = vand.u32 4294901760, %v48_v57  ;;  %v8301_v11 = vand.u32 4294901760, %v6062_v63 }
  0x19   :  { %v5160_v19 = vpack.c.bf16 %v425_v3, %v418_v2  ;;  %5139 = vmatpush3.bf16.msra.mxu0 %v6127_v4  ;;  %v8300_v23 = vand.u32 4294901760, %v6083_v12  ;;  %v192_v24 = vand.u32 4294901760, %v31_v1  ;;  %v6143_v30 = vsub.f32 %v30_v29, %v189_v55  ;;  %v49_v29 = vld [vmem:[%s8297_s1 + $0x108] sm:$0xff]  ;;  %v50_v55 = vld [vmem:[%s8297_s1 + $0x110] sm:$0xff] }
  0x1a   :  { %v306_v37 = vand.u32 4294901760, %v305_v6  ;;  %v313_v47 = vand.u32 4294901760, %v312_v7  ;;  %v6145_v48 = vpack.c.bf16 %v243_v13, %v240_v8  ;;  %v6147_v51 = vsub.f32 %v47_v56, %v240_v8  ;;  %v33_v8 = vld [vmem:[%s8297_s1 + $0x88] sm:$0xff] }
  0x1b   :  { %5161 = vmatprep.subr.bf16.mxu1 %v5160_v19  ;;  %v431_v52 = vsub.f32 %v6062_v63, %v8301_v11  ;;  %v438_v59 = vsub.f32 %v6083_v12, %v8300_v23  ;;  %v195_v2 = vand.u32 4294901760, %v32_v18  ;;  %v6162_v56 = vsub.f32 %v48_v57, %v243_v13 }
  0x1c   :  { %v5162_v3 = vpack.c.bf16 %v313_v47, %v306_v37  ;;  %5141 = vmatprep.subr.bf16.mxu0 %v6145_v48  ;;  %v8304_v6 = vand.u32 4294901760, %v6087_v17  ;;  %v8307_v7 = vand.u32 4294901760, %v6101_v42  ;;  %v6171_v0 = vsub.f32 %v31_v1, %v192_v24 }
  0x1d   :  { %v432_v19 = vand.u32 4294901760, %v431_v52  ;;  %v439_v23 = vand.u32 4294901760, %v438_v59  ;;  %v6169_v11 = vpack.c.bf16 %v195_v2, %v192_v24  ;;  %v246_v37 = vand.u32 4294901760, %v49_v29  ;;  %v34_v52 = vld [vmem:[%s8297_s1 + $0x90] sm:$0xff] }
  0x1e   :  { %5163 = vmatpush3.bf16.msra.mxu1 %v5162_v3  ;;  %v319_v57 = vsub.f32 %v6087_v17, %v8304_v6  ;;  %v326_v13 = vsub.f32 %v6101_v42, %v8307_v7  ;;  %v249_v47 = vand.u32 4294901760, %v50_v55  ;;  %v8310_v1 = vand.u32 4294901760, %v6105_v50 }
  0x1f   :  { %8488 = vst [vmem:[#allocation2_spill] sm:$0xff] %v6169_v11  ;;  %v5164_v59 = vpack.c.bf16 %v439_v23, %v432_v19  ;;  %5143 = vmatpush3.bf16.msra.mxu0 %v6169_v11  ;;  %v8309_v24 = vand.u32 4294901760, %v6120_v60  ;;  %v198_v3 = vand.u32 4294901760, %v33_v8  ;;  %v6185_v61 = vsub.f32 %v32_v18, %v195_v2  ;;  %v51_v18 = vld [vmem:[%s8297_s1 + $0x118] sm:$0xff]  ;;  %v52_v2 = vld [vmem:[%s8297_s1 + $0x120] sm:$0xff] }
  0x20   :  { %v320_v6 = vand.u32 4294901760, %v319_v57  ;;  %v327_v34 = vand.u32 4294901760, %v326_v13  ;;  %v6187_v33 = vpack.c.bf16 %v249_v47, %v246_v37  ;;  %v6189_v7 = vsub.f32 %v49_v29, %v246_v37 }
  0x21   :  { %5165 = vmatprep.subr.bf16.mxu1 %v5164_v59  ;;  %v445_v23 = vsub.f32 %v6105_v50, %v8310_v1  ;;  %v452_v19 = vsub.f32 %v6120_v60, %v8309_v24  ;;  %v201_v10 = vand.u32 4294901760, %v34_v52  ;;  %v6204_v29 = vsub.f32 %v50_v55, %v249_v47  ;;  %v35_v59 = vld [vmem:[%s8297_s1 + $0x98] sm:$0xff] }
  0x22   :  { %8489 = vst [vmem:[#allocation3_spill] sm:$0xff] %v6187_v33  ;;  %v5166_v57 = vpack.c.bf16 %v327_v34, %v320_v6  ;;  %5145 = vmatprep.subr.bf16.mxu0 %v6187_v33  ;;  %v8314_v13 = vand.u32 4294901760, %v6129_v5  ;;  %v8317_v37 = vand.u32 4294901760, %v6143_v30  ;;  %v6213_v54 = vsub.f32 %v33_v8, %v198_v3 }
  0x23   :  { %v446_v24 = vand.u32 4294901760, %v445_v23  ;;  %v453_v1 = vand.u32 4294901760, %v452_v19  ;;  %v6211_v9 = vpack.c.bf16 %v201_v10, %v198_v3  ;;  %v252_v6 = vand.u32 4294901760, %v51_v18  ;;  %v36_v23 = vld [vmem:[%s8297_s1 + $0xa0] sm:$0xff] }
  0x24   :  { %5167 = vmatpush3.bf16.msra.mxu1 %v5166_v57  ;;  %v333_v34 = vsub.f32 %v6129_v5, %v8314_v13  ;;  %v340_v55 = vsub.f32 %v6143_v30, %v8317_v37  ;;  %v255_v47 = vand.u32 4294901760, %v52_v2  ;;  %v8320_v8 = vand.u32 4294901760, %v6147_v51 }
  0x25   :  { %8490 = vst [vmem:[#allocation4_spill] sm:$0xff] %v6211_v9  ;;  %v5168_v19 = vpack.c.bf16 %v453_v1, %v446_v24  ;;  %5147 = vmatpush3.bf16.msra.mxu0 %v6211_v9  ;;  %v8319_v3 = vand.u32 4294901760, %v6162_v56  ;;  %v204_v57 = vand.u32 4294901760, %v35_v59  ;;  %v6227_v53 = vsub.f32 %v34_v52, %v201_v10  ;;  %v150_v10 = vld [vmem:[%s8298_s0 + $0x8] sm:$0xff] }
  0x26   :  { %v334_v13 = vand.u32 4294901760, %v333_v34  ;;  %v341_v36 = vand.u32 4294901760, %v340_v55  ;;  %v6229_v35 = vpack.c.bf16 %v255_v47, %v252_v6  ;;  %v6231_v37 = vsub.f32 %v51_v18, %v252_v6  ;;  %v149_v6 = vld [vmem:[%s8298_s0] sm:$0xff] }
  0x27   :  { %5169 = vmatprep.subr.bf16.mxu1 %v5168_v19  ;;  %v459_v1 = vsub.f32 %v6147_v51, %v8320_v8  ;;  %v466_v24 = vsub.f32 %v6162_v56, %v8319_v3  ;;  %v207_v44 = vand.u32 4294901760, %v36_v23  ;;  %v6243_v34 = vsub.f32 %v52_v2, %v255_v47 }
  0x28   :  { %8491 = vst [vmem:[#allocation5_spill] sm:$0xff] %v6229_v35  ;;  %v5170_v52 = vpack.c.bf16 %v341_v36, %v334_v13  ;;  %5149 = vmatprep.subr.bf16.mxu0 %v6229_v35  ;;  %v8324_v18 = vand.u32 4294901760, %v6171_v0  ;;  %v8325_v55 = vand.u32 4294901760, %v6185_v61  ;;  %v6252_v41 = vsub.f32 %v35_v59, %v204_v57 }
  0x29   :  { %v460_v19 = vand.u32 4294901760, %v459_v1  ;;  %v467_v3 = vand.u32 4294901760, %v466_v24  ;;  %v6250_v8 = vpack.c.bf16 %v207_v44, %v204_v57  ;;  %v6260_v13 = vand.u32 4294901760, %v150_v10 }
  0x2a   :  { %5171 = vmatpush3.bf16.msra.mxu1 %v5170_v52  ;;  %v347_v36 = vsub.f32 %v6171_v0, %v8324_v18  ;;  %v354_v2 = vsub.f32 %v6185_v61, %v8325_v55  ;;  %v8328_v47 = vand.u32 4294901760, %v6189_v7  ;;  %v8334_v1 = vand.u32 4294901760, %v6204_v29 }
  0x2b   :  { %8492 = vst [vmem:[#allocation6_spill] sm:$0xff] %v6250_v8  ;;  %8493 = vst [vmem:[#allocation7_spill] sm:$0xff] %v6260_v13  ;;  %v5172_v35 = vpack.c.bf16 %v467_v3, %v460_v19  ;;  %5151 = vmatpush3.bf16.msra.mxu0 %v6250_v8  ;;  %v5184_v59 = vpack.c.bf16 %v6011_v32, %v6009_v31  ;;  %v6267_v57 = vand.u32 4294901760, %v149_v6  ;;  %498 = vmatprep.mubr.f32.mxu1 %v6260_v13 }
  0x2c   :  { %v348_v24 = vand.u32 4294901760, %v347_v36  ;;  %v355_v52 = vand.u32 4294901760, %v354_v2  ;;  %v6270_v18 = vsub.f32 %v150_v10, %v6260_v13  ;;  %v473_v55 = vsub.f32 %v6189_v7, %v8328_v47 }
  0x2d   :  { %5173 = vmatprep.subr.bf16.mxu1 %v5172_v35  ;;  %v480_v3 = vsub.f32 %v6204_v29, %v8334_v1  ;;  %5185 = vmatprep.subr.bf16.mxu0 %v5184_v59  ;;  %v6280_v19 = vsub.f32 %v149_v6, %v6267_v57  ;;  %v8333_v36 = vand.u32 4294901760, %v6213_v54  ;;  %v8335_v10 = vand.u32 4294901760, %v6227_v53 }
  0x2e   :  { %v6284_v2 = vsub.f32 %v36_v23, %v207_v44  ;;  %v5174_v8 = vpack.c.bf16 %v355_v52, %v348_v24  ;;  %v8336_v47 = vand.u32 4294901760, %v6270_v18  ;;  %v474_v9 = vand.u32 4294901760, %v473_v55 }
  0x2f   :  { %v481_v13 = vand.u32 4294901760, %v480_v3  ;;  %v265_v35 = vand.u32 4294901760, %v6280_v19  ;;  %v361_v59 = vsub.f32 %v6213_v54, %v8333_v36  ;;  %v368_v6 = vsub.f32 %v6227_v53, %v8335_v10 }
  0x30   :  { %5175 = vmatpush3.bf16.msra.mxu1 %v5174_v8  ;;  %v260_v44 = vsub.f32 %v6270_v18, %v8336_v47  ;;  %v5186_v23 = vpack.c.bf16 %v5989_v21, %v5979_v15  ;;  %v8341_v55 = vand.u32 4294901760, %v6231_v37  ;;  %v8344_v24 = vand.u32 4294901760, %v6243_v34 }
  0x31   :  { %v5176_v52 = vpack.c.bf16 %v481_v13, %v474_v9  ;;  %v266_v3 = vsub.f32 %v6280_v19, %v265_v35  ;;  %v362_v36 = vand.u32 4294901760, %v361_v59  ;;  %v369_v1 = vand.u32 4294901760, %v368_v6 }
  0x32   :  { %v261_v10 = vand.u32 4294901760, %v260_v44  ;;  %v487_v8 = vsub.f32 %v6231_v37, %v8341_v55  ;;  %v494_v47 = vsub.f32 %v6243_v34, %v8344_v24  ;;  %v8343_v33 = vand.u32 4294901760, %v6252_v41 }
  0x33   :  { %5177 = vmatprep.subr.bf16.mxu1 %v5176_v52  ;;  %v267_v11 = vand.u32 4294901760, %v266_v3  ;;  %v5178_v9 = vpack.c.bf16 %v369_v1, %v362_v36  ;;  %v5188_v13 = vpack.c.bf16 %v6002_v26, %v6000_v25  ;;  %v8342_v59 = vand.u32 4294901760, %v6284_v2 }
  0x34   :  { %262 = vmatprep.mubr.f32.mxu0 %v261_v10  ;;  %v488_v6 = vand.u32 4294901760, %v487_v8  ;;  %v495_v44 = vand.u32 4294901760, %v494_v47  ;;  %v375_v55 = vsub.f32 %v6252_v41, %v8343_v33  ;;  %v5190_v3 = vpack.c.bf16 %v6019_v38, %v6006_v28 }
  0x35   :  { %268 = vmatmul.mubr.f32.vlgmr.msra.gmra.mrb[0].mxu0 %v267_v11  ;;  %5179 = vmatpush3.bf16.msra.mxu1 %v5178_v9  ;;  %v382_v52 = vsub.f32 %v6284_v2, %v8342_v59  ;;  %v5192_v10 = vpack.c.bf16 %v6029_v43, %v6023_v40  ;;  %v5194_v11 = vpack.c.bf16 %v6058_v58, %v6034_v46  ;;  %v8495_v9 = vand.u32 4294901760, %v6011_v32 }
  0x36   :  { %5187 = vmatpush3.bf16.msra.mxu0 %v5186_v23  ;;  %v5180_v1 = vpack.c.bf16 %v495_v44, %v488_v6  ;;  %v376_v36 = vand.u32 4294901760, %v375_v55  ;;  %635 = vmatprep.mubr.f32.mxu0 %v6270_v18  ;;  %v5196_v8 = vpack.c.bf16 %v6083_v12, %v6062_v63  ;;  %v8494_v55 = vand.u32 4294901760, %v6009_v31 }
  0x37   :  { %5189 = vmatprep.subr.bf16.mxu0 %v5188_v13  ;;  %v383_v47 = vand.u32 4294901760, %v382_v52  ;;  %v8496_v44 = vand.u32 4294901760, %v5979_v15  ;;  %v8497_v13 = vand.u32 4294901760, %v5989_v21  ;;  %v8498_v59 = vand.u32 4294901760, %v6000_v25 }
  0x38   :  { %5181 = vmatprep.subr.bf16.mxu1 %v5180_v1  ;;  %v5248_v6 = vpack.c.bf16 %v8495_v9, %v8494_v55  ;;  %v8499_v1 = vand.u32 4294901760, %v6002_v26  ;;  %v8500_v24 = vand.u32 4294901760, %v6006_v28  ;;  %v8502_v31 = vand.u32 4294901760, %v6023_v40 }
  0x39   :  { %v5182_v23 = vpack.c.bf16 %v383_v47, %v376_v36  ;;  %v5250_v52 = vpack.c.bf16 %v8497_v13, %v8496_v44  ;;  %v8501_v36 = vand.u32 4294901760, %v6019_v38  ;;  %v8503_v32 = vand.u32 4294901760, %v6029_v43  ;;  %v8517_v13 = vld [vmem:[#allocation7_spill] sm:$0xff] }
  0x3a   :  { %v5252_v33 = vpack.c.bf16 %v8499_v1, %v8498_v59  ;;  %5191 = vmatpush3.bf16.msra.mxu0 %v5190_v3  ;;  %v8504_v15 = vand.u32 4294901760, %v6034_v46  ;;  %v8505_v21 = vand.u32 4294901760, %v6058_v58  ;;  %v8506_v25 = vand.u32 4294901760, %v6062_v63  ;;  %v70_v1 = vld [vmem:[%s8297_s1 + $0x1b0] sm:$0xff] }
  0x3b   :  { %v5254_v47 = vpack.c.bf16 %v8501_v36, %v8500_v24  ;;  %v5256_v55 = vpack.c.bf16 %v8503_v32, %v8502_v31  ;;  %v8507_v26 = vand.u32 4294901760, %v6083_v12  ;;  %5183 = vmatpush3.bf16.msra.mxu1 %v5182_v23  ;;  %5193 = vmatprep.subr.bf16.mxu0 %v5192_v10  ;;  %v8508_v28 = vand.u32 4294901760, %v6087_v17  ;;  %v53_v36 = vld [vmem:[%s8297_s1 + $0x128] sm:$0xff]  ;;  %v8518_v31 = vld [vmem:[#allocation4_spill] sm:$0xff]  ;;  %v8519_v32 = vld [vmem:[#allocation5_spill] sm:$0xff] }
  0x3c   :  { %v6353_v9 = vpack.c.bf16 %v8505_v21, %v8504_v15  ;;  %v8509_v38 = vand.u32 4294901760, %v6101_v42  ;;  %v8510_v43 = vand.u32 4294901760, %v6105_v50  ;;  %v8511_v46 = vand.u32 4294901760, %v6120_v60  ;;  %5217 = vmatprep.subr.bf16.mxu1 %v5977_v14 }
  0x3d   :  { %v6359_v59 = vpack.c.bf16 %v8507_v26, %v8506_v25  ;;  %v8512_v63 = vand.u32 4294901760, %v6129_v5  ;;  %v8513_v12 = vand.u32 4294901760, %v6143_v30  ;;  %v5198_v3 = vpack.c.bf16 %v6101_v42, %v6087_v17  ;;  %v8520_v26 = vld [vmem:[#allocation6_spill] sm:$0xff] }
  0x3e   :  { %v6365_v40 = vpack.c.bf16 %v8509_v38, %v8508_v28  ;;  %v6371_v58 = vpack.c.bf16 %v8511_v46, %v8510_v43  ;;  %500 = vmatmul.mubr.f32.vlgmr.msra.gmra.mrb[0].mxu1 %v6267_v57  ;;  %5195 = vmatpush3.bf16.msra.mxu0 %v5194_v11  ;;  %v5200_v10 = vpack.c.bf16 %v6120_v60, %v6105_v50  ;;  %v8514_v23 = vand.u32 4294901760, %v6270_v18  ;;  %v8515_v18 = vld [vmem:[#allocation2_spill] sm:$0xff]  ;;  %v8516_v11 = vld [vmem:[#allocation3_spill] sm:$0xff]  ;;  %v71_v28 = vld [vmem:[%s8297_s1 + $0x1b8] sm:$0xff] }
  0x3f   :  { %v6377_v24 = vpack.c.bf16 %v8513_v12, %v8512_v63  ;;  %5219 = vmatpush3.bf16.msra.mxu1 %v5987_v20  ;;  %5197 = vmatprep.subr.bf16.mxu0 %v5196_v8  ;;  %v5202_v44 = vpack.c.bf16 %v6143_v30, %v6129_v5  ;;  %v5204_v17 = vpack.c.bf16 %v6162_v56, %v6147_v51  ;;  %v69_v8 = vld [vmem:[%s8297_s1 + $0x1a8] sm:$0xff]  ;;  %v1075_v15 = vand.u32 4294901760, %v70_v1  ;;  %v72_v38 = vld [vmem:[%s8297_s1 + $0x1c0] sm:$0xff]  ;;  %v55_v43 = vld [vmem:[%s8297_s1 + $0x138] sm:$0xff] }
  0x40   :  { %5221 = vmatprep.subr.bf16.mxu1 %v5991_v22  ;;  %742 = vmatprep.mubr.f32.mxu1 %v8514_v23  ;;  %v5206_v42 = vpack.c.bf16 %v6185_v61, %v6171_v0  ;;  %v5208_v50 = vpack.c.bf16 %v6204_v29, %v6189_v7  ;;  %v5210_v60 = vpack.c.bf16 %v6227_v53, %v6213_v54  ;;  %v1024_v21 = vand.u32 4294901760, %v53_v36 }
  0x41   :  { %v5212_v5 = vpack.c.bf16 %v6243_v34, %v6231_v37  ;;  %v5214_v30 = vpack.c.bf16 %v6284_v2, %v6252_v41  ;;  %v8522_v12 = vand.u32 4294901760, %v6162_v56  ;;  %v1081_v23 = vand.u32 4294901760, %v72_v38 }
  0x42   :  { %5199 = vmatpush3.bf16.msra.mxu0 %v5198_v3  ;;  %v6447_v46 = vsub.f32 %v53_v36, %v1024_v21 }
  0x43   :  { %5223 = vmatpush3.bf16.msra.mxu1 %v6004_v27  ;;  %5201 = vmatprep.subr.bf16.mxu0 %v5200_v10  ;;  %v1078_v10 = vand.u32 4294901760, %v71_v28 }
  0x44   :  { %5225 = vmatprep.subr.bf16.mxu1 %v6021_v39 }
  0x45   :  { %v6514_v36 = vpack.c.bf16 %v1081_v23, %v1078_v10 }
  0x46   :  { %5203 = vmatpush3.bf16.msra.mxu0 %v5202_v44  ;;  %v8523_v44 = vand.u32 4294901760, %v6171_v0  ;;  %v8528_v0 = vand.u32 4294901760, %v6227_v53  ;;  %v152_v53 = vld [vmem:[%s8298_s0 + $0x18] sm:$0xff] }
  0x47   :  { %5227 = vmatpush3.bf16.msra.mxu1 %v6032_v45  ;;  %5205 = vmatprep.subr.bf16.mxu0 %v5204_v17  ;;  %v8524_v17 = vand.u32 4294901760, %v6185_v61  ;;  %v8527_v61 = vand.u32 4294901760, %v6213_v54  ;;  %8533 = vst [vmem:[#allocation2_spill] sm:$0xff] %v6514_v36 }
  0x48   :  { %5229 = vmatprep.subr.bf16.mxu1 %v6060_v62 }
  0x4a   :  { %5207 = vmatpush3.bf16.msra.mxu0 %v5206_v42  ;;  %v5270_v42 = vpack.c.bf16 %v8524_v17, %v8523_v44  ;;  %v6524_v44 = vand.u32 4294901760, %v152_v53 }
  0x4b   :  { %5231 = vmatpush3.bf16.msra.mxu1 %v6085_v16  ;;  %5209 = vmatprep.subr.bf16.mxu0 %v5208_v50  ;;  %v73_v50 = vld [vmem:[%s8297_s1 + $0x1c8] sm:$0xff] }
  0x4c   :  { %5233 = vmatprep.subr.bf16.mxu1 %v6103_v49  ;;  %8535 = vst [vmem:[#allocation7_spill] sm:$0xff] %v6524_v44 }
  0x4e   :  { %5211 = vmatpush3.bf16.msra.mxu0 %v5210_v60 }
  0x4f   :  { %5235 = vmatpush3.bf16.msra.mxu1 %v6127_v4  ;;  %5213 = vmatprep.subr.bf16.mxu0 %v5212_v5  ;;  %v8531_v5 = vand.u32 4294901760, %v6252_v41  ;;  %v57_v41 = vld [vmem:[%s8297_s1 + $0x148] sm:$0xff] }
  0x50   :  { %5237 = vmatprep.subr.bf16.mxu1 %v6145_v48 }
  0x52   :  { %5215 = vmatpush3.bf16.msra.mxu0 %v5214_v30  ;;  %v8532_v30 = vand.u32 4294901760, %v6284_v2  ;;  %v8353_v2 = vand.u32 4294901760, %v6447_v46 }
  0x53   :  { %5239 = vmatpush3.bf16.msra.mxu1 %v8515_v18  ;;  %5249 = vmatprep.subr.bf16.mxu0 %v5248_v6  ;;  %v54_v6 = vld [vmem:[%s8297_s1 + $0x130] sm:$0xff] }
  0x54   :  { %5241 = vmatprep.subr.bf16.mxu1 %v8516_v11  ;;  %v1027_v25 = vand.u32 4294901760, %v54_v6 }
  0x55   :  { %638 = vmatmul.mubr.f32.vlgmr.msra.gmra.mrb[2].mxu0 %v6280_v19  ;;  %v8525_v19 = vand.u32 4294901760, %v6189_v7  ;;  %v6481_v7 = vpack.c.bf16 %v8528_v0, %v8527_v61 }
  0x56   :  { %5251 = vmatpush3.bf16.msra.mxu0 %v5250_v52  ;;  %912 = vmatprep.mubr.f32.mxu0 %v8517_v13  ;;  %v1072_v52 = vand.u32 4294901760, %v69_v8  ;;  %v6449_v63 = vsub.f32 %v54_v6, %v1027_v25  ;;  %v1084_v6 = vand.u32 4294901760, %v73_v50 }
  0x57   :  { %5243 = vmatpush3.bf16.msra.mxu1 %v8518_v31  ;;  %5253 = vmatprep.subr.bf16.mxu0 %v5252_v33 }
  0x58   :  { %5245 = vmatprep.subr.bf16.mxu1 %v8519_v32  ;;  %v6437_v33 = vsub.f32 %v69_v8, %v1072_v52  ;;  %v6493_v8 = vpack.c.bf16 %v8532_v30, %v8531_v5  ;;  %v6500_v54 = vpack.c.bf16 %v1075_v15, %v1072_v52  ;;  %v6552_v17 = vsub.f32 %v73_v50, %v1084_v6  ;;  %v60_v50 = vld [vmem:[%s8297_s1 + $0x160] sm:$0xff] }
  0x5a   :  { %5255 = vmatpush3.bf16.msra.mxu0 %v5254_v47  ;;  %v56_v47 = vld [vmem:[%s8297_s1 + $0x140] sm:$0xff] }
  0x5b   :  { %5247 = vmatpush3.bf16.msra.mxu1 %v8520_v26  ;;  %5257 = vmatprep.subr.bf16.mxu0 %v5256_v55  ;;  %v6445_v55 = vsub.f32 %v70_v1, %v1075_v15  ;;  %v1033_v56 = vand.u32 4294901760, %v56_v47  ;;  %v6512_v1 = vpack.c.bf16 %v1027_v25, %v1024_v21  ;;  %v6518_v15 = vsub.f32 %v71_v28, %v1078_v10  ;;  %v76_v28 = vld [vmem:[%s8297_s1 + $0x1e0] sm:$0xff] }
  0x5c   :  { %5281 = vmatprep.subr.bf16.mxu1 %v5977_v14  ;;  %v8521_v14 = vand.u32 4294901760, %v6147_v51  ;;  %v1030_v51 = vand.u32 4294901760, %v55_v43  ;;  %v1036_v25 = vand.u32 4294901760, %v57_v41 }
  0x5e   :  { %746 = vmatmul.mubr.f32.vlgmr.msra.gmra.mrb[2].mxu1 %v265_v35  ;;  %5259 = vmatpush3.bf16.msra.mxu0 %v6353_v9  ;;  %v5268_v3 = vpack.c.bf16 %v8522_v12, %v8521_v14  ;;  %v8526_v35 = vand.u32 4294901760, %v6204_v29  ;;  %v8529_v29 = vand.u32 4294901760, %v6231_v37  ;;  %v8354_v37 = vand.u32 4294901760, %v6445_v55 }
  0x5f   :  { %5283 = vmatpush3.bf16.msra.mxu1 %v5987_v20  ;;  %5261 = vmatprep.subr.bf16.mxu0 %v6359_v59  ;;  %v74_v20 = vld [vmem:[%s8297_s1 + $0x1d0] sm:$0xff]  ;;  %v8530_v59 = vand.u32 4294901760, %v6243_v34  ;;  %v6520_v14 = vsub.f32 %v72_v38, %v1081_v23  ;;  %v6522_v12 = vpack.c.bf16 %v1033_v56, %v1030_v51  ;;  %v6538_v38 = vsub.f32 %v56_v47, %v1033_v56 }
  0x60   :  { %v6468_v9 = vpack.c.bf16 %v8526_v35, %v8525_v19  ;;  %5285 = vmatprep.subr.bf16.mxu1 %v5991_v22  ;;  %1016 = vmatprep.mubr.f32.mxu1 %v8517_v13  ;;  %v8357_v22 = vand.u32 4294901760, %v6437_v33  ;;  %v58_v34 = vld [vmem:[%s8297_s1 + $0x150] sm:$0xff]  ;;  %v8352_v13 = vand.u32 4294901760, %v6449_v63  ;;  %v1087_v52 = vand.u32 4294901760, %v74_v20 }
  0x61   :  { %v6487_v60 = vpack.c.bf16 %v8530_v59, %v8529_v29  ;;  %8534 = vst [vmem:[#allocation3_spill] sm:$0xff] %v6522_v12  ;;  %v6557_v19 = vsub.f32 %v152_v53, %v6524_v44  ;;  %v8348_v56 = vand.u32 4294901760, %v6518_v15  ;;  %v8347_v61 = vand.u32 4294901760, %v6520_v14 }
  0x62   :  { %5263 = vmatpush3.bf16.msra.mxu0 %v6365_v40  ;;  %v6527_v40 = vsub.f32 %v55_v43, %v1030_v51  ;;  %v1251_v21 = vsub.f32 %v6437_v33, %v8357_v22  ;;  %v1139_v43 = vsub.f32 %v6447_v46, %v8353_v2  ;;  %v1146_v10 = vsub.f32 %v6449_v63, %v8352_v13 }
  0x63   :  { %5287 = vmatpush3.bf16.msra.mxu1 %v6004_v27  ;;  %5265 = vmatprep.subr.bf16.mxu0 %v6371_v58  ;;  %v1039_v27 = vand.u32 4294901760, %v58_v34  ;;  %v75_v58 = vld [vmem:[%s8297_s1 + $0x1d8] sm:$0xff]  ;;  %v6550_v23 = vpack.c.bf16 %v1087_v52, %v1084_v6  ;;  %v6554_v47 = vsub.f32 %v74_v20, %v1087_v52  ;;  %v1093_v51 = vand.u32 4294901760, %v76_v28 }
  0x64   :  { %5289 = vmatprep.subr.bf16.mxu1 %v6021_v39  ;;  %v1258_v39 = vsub.f32 %v6445_v55, %v8354_v37  ;;  %v1090_v35 = vand.u32 4294901760, %v75_v58  ;;  %v1252_v20 = vand.u32 4294901760, %v1251_v21  ;;  %v1140_v59 = vand.u32 4294901760, %v1139_v43 }
  0x65   :  { %8536 = vst [vmem:[#allocation4_spill] sm:$0xff] %v6550_v23  ;;  %v6569_v0 = vpack.c.bf16 %v1039_v27, %v1036_v25  ;;  %v1147_v5 = vand.u32 4294901760, %v1146_v10  ;;  %v8345_v30 = vand.u32 4294901760, %v6527_v40  ;;  %v1045_v6 = vand.u32 4294901760, %v60_v50 }
  0x66   :  { %5267 = vmatpush3.bf16.msra.mxu0 %v6377_v24  ;;  %v59_v24 = vld [vmem:[%s8297_s1 + $0x158] sm:$0xff]  ;;  %v1259_v29 = vand.u32 4294901760, %v1258_v39  ;;  %v8346_v52 = vand.u32 4294901760, %v6538_v38  ;;  %v8358_v21 = vand.u32 4294901760, %v6557_v19  ;;  %v8349_v39 = vand.u32 4294901760, %v6554_v47 }
  0x67   :  { %5291 = vmatpush3.bf16.msra.mxu1 %v6032_v45  ;;  %5269 = vmatprep.subr.bf16.mxu0 %v5268_v3  ;;  %8537 = vst [vmem:[#allocation5_spill] sm:$0xff] %v6569_v0  ;;  %v6571_v45 = vsub.f32 %v57_v41, %v1036_v25  ;;  %v6573_v3 = vsub.f32 %v58_v34, %v1039_v27  ;;  %v1042_v53 = vand.u32 4294901760, %v59_v24 }
  0x68   :  { %5293 = vmatprep.subr.bf16.mxu1 %v6060_v62  ;;  %v77_v62 = vld [vmem:[%s8297_s1 + $0x1e8] sm:$0xff]  ;;  %v6583_v41 = vpack.c.bf16 %v1093_v51, %v1090_v35  ;;  %v1272_v34 = vsub.f32 %v6520_v14, %v8347_v61  ;;  %v6592_v25 = vsub.f32 %v75_v58, %v1090_v35  ;;  %v6594_v27 = vsub.f32 %v76_v28, %v1093_v51 }
  0x69   :  { %v6601_v43 = vpack.c.bf16 %v1259_v29, %v1252_v20  ;;  %v6603_v10 = vpack.c.bf16 %v1147_v5, %v1140_v59  ;;  %v1096_v58 = vand.u32 4294901760, %v77_v62  ;;  %v6609_v28 = vpack.c.bf16 %v1045_v6, %v1042_v53 }
  0x6a   :  { %5271 = vmatpush3.bf16.msra.mxu0 %v5270_v42  ;;  %8538 = vst [vmem:[#allocation6_spill] sm:$0xff] %v6583_v41  ;;  %v1265_v42 = vsub.f32 %v6518_v15, %v8348_v56  ;;  %v1160_v35 = vsub.f32 %v6538_v38, %v8346_v52  ;;  %v8350_v51 = vand.u32 4294901760, %v6571_v45  ;;  %v1122_v20 = vsub.f32 %v6557_v19, %v8358_v21  ;;  %v62_v56 = vld [vmem:[%s8297_s1 + $0x170] sm:$0xff] }
  0x6b   :  { %5295 = vmatpush3.bf16.msra.mxu1 %v6085_v16  ;;  %5273 = vmatprep.subr.bf16.mxu0 %v6468_v9  ;;  %v78_v16 = vld [vmem:[%s8297_s1 + $0x1f0] sm:$0xff]  ;;  %v8351_v9 = vand.u32 4294901760, %v6552_v17  ;;  %8539 = vst [vmem:[#allocation8_spill] sm:$0xff] %v6609_v28  ;;  %v1273_v59 = vand.u32 4294901760, %v1272_v34  ;;  %v6625_v52 = vsub.f32 %v59_v24, %v1042_v53  ;;  %v6627_v61 = vsub.f32 %v60_v50, %v1045_v6 }
  0x6c   :  { %5297 = vmatprep.subr.bf16.mxu1 %v6103_v49  ;;  %v1153_v49 = vsub.f32 %v6527_v40, %v8345_v30  ;;  %v1266_v29 = vand.u32 4294901760, %v1265_v42  ;;  %v1099_v5 = vand.u32 4294901760, %v78_v16  ;;  %v8355_v30 = vand.u32 4294901760, %v6573_v3 }
  0x6d   :  { %v6635_v34 = vsub.f32 %v77_v62, %v1096_v58  ;;  %v8359_v24 = vand.u32 4294901760, %v6594_v27  ;;  %v1161_v50 = vand.u32 4294901760, %v1160_v35  ;;  %v1167_v6 = vsub.f32 %v6571_v45, %v8350_v51  ;;  %v79_v62 = vld [vmem:[%s8297_s1 + $0x1f8] sm:$0xff] }
  0x6e   :  { %5275 = vmatpush3.bf16.msra.mxu0 %v6481_v7  ;;  %v61_v7 = vld [vmem:[%s8297_s1 + $0x168] sm:$0xff]  ;;  %v1154_v42 = vand.u32 4294901760, %v1153_v49  ;;  %v80_v49 = vld [vmem:[%s8297_s1 + $0x200] sm:$0xff]  ;;  %v6656_v35 = vpack.c.bf16 %v1099_v5, %v1096_v58  ;;  %v1174_v51 = vsub.f32 %v6573_v3, %v8355_v30  ;;  %v1051_v37 = vand.u32 4294901760, %v62_v56 }
  0x6f   :  { %5299 = vmatpush3.bf16.msra.mxu1 %v6127_v4  ;;  %5277 = vmatprep.subr.bf16.mxu0 %v6487_v60  ;;  %v1279_v4 = vsub.f32 %v6552_v17, %v8351_v9  ;;  %v1286_v60 = vsub.f32 %v6554_v47, %v8349_v39  ;;  %v1048_v53 = vand.u32 4294901760, %v61_v7  ;;  %v1123_v39 = vand.u32 4294901760, %v1122_v20  ;;  %v64_v58 = vld [vmem:[%s8297_s1 + $0x180] sm:$0xff] }
  0x70   :  { %5301 = vmatprep.subr.bf16.mxu1 %v6145_v48  ;;  %v8356_v48 = vand.u32 4294901760, %v6592_v25  ;;  %8540 = vst [vmem:[#allocation9_spill] sm:$0xff] %v6656_v35  ;;  %v6662_v9 = vsub.f32 %v78_v16, %v1099_v5  ;;  %v1102_v20 = vand.u32 4294901760, %v79_v62  ;;  %v1300_v16 = vsub.f32 %v6594_v27, %v8359_v24 }
  0x71   :  { %v1280_v13 = vand.u32 4294901760, %v1279_v4  ;;  %v1287_v2 = vand.u32 4294901760, %v1286_v60  ;;  %v6680_v5 = vsub.f32 %v61_v7, %v1048_v53  ;;  %v1168_v4 = vand.u32 4294901760, %v1167_v6 }
  0x72   :  { %5279 = vmatpush3.bf16.msra.mxu0 %v6493_v8  ;;  %v6654_v8 = vpack.c.bf16 %v1273_v59, %v1266_v29  ;;  %v1105_v29 = vand.u32 4294901760, %v80_v49  ;;  %v6678_v59 = vpack.c.bf16 %v1161_v50, %v1154_v42  ;;  %v1175_v30 = vand.u32 4294901760, %v1174_v51  ;;  %v81_v42 = vld [vmem:[%s8297_s1 + $0x208] sm:$0xff] }
  0x73   :  { %5303 = vmatpush3.bf16.msra.mxu1 %v8515_v18  ;;  %5313 = vmatprep.subr.bf16.mxu0 %v6500_v54  ;;  %v63_v18 = vld [vmem:[%s8297_s1 + $0x178] sm:$0xff]  ;;  %v1057_v22 = vand.u32 4294901760, %v64_v58  ;;  %v6690_v7 = vpack.c.bf16 %v1287_v2, %v1280_v13  ;;  %v6692_v50 = vpack.c.bf16 %v1051_v37, %v1048_v53  ;;  %v8360_v51 = vand.u32 4294901760, %v6635_v34 }
  0x74   :  { %5305 = vmatprep.subr.bf16.mxu1 %v8516_v11  ;;  %v1293_v11 = vsub.f32 %v6592_v25, %v8356_v48  ;;  %v1054_v48 = vand.u32 4294901760, %v63_v18  ;;  %v6700_v6 = vpack.c.bf16 %v1105_v29, %v1102_v20  ;;  %v1301_v21 = vand.u32 4294901760, %v1300_v16 }
  0x75   :  { %914 = vmatmul.mubr.f32.vlgmr.msra.gmra.mrb[4].mxu0 %v6267_v57  ;;  %v6711_v2 = vsub.f32 %v80_v49, %v1105_v29  ;;  %v8545_v13 = vand.u32 4294901760, %v6625_v52  ;;  %v1108_v53 = vand.u32 4294901760, %v81_v42  ;;  %v8546_v60 = vand.u32 4294901760, %v6627_v61 }
  0x76   :  { %5315 = vmatpush3.bf16.msra.mxu0 %v6512_v1  ;;  %1124 = vmatprep.mubr.f32.mxu0 %v1123_v39  ;;  %v6694_v39 = vsub.f32 %v62_v56, %v1051_v37  ;;  %8542 = vst [vmem:[#allocation11_spill] sm:$0xff] %v6700_v6  ;;  %v1294_v24 = vand.u32 4294901760, %v1293_v11  ;;  %v6709_v37 = vsub.f32 %v79_v62, %v1102_v20 }
  0x77   :  { %5307 = vmatpush3.bf16.msra.mxu1 %v8518_v31  ;;  %5317 = vmatprep.subr.bf16.mxu0 %v6514_v36  ;;  %v82_v31 = vld [vmem:[%s8297_s1 + $0x210] sm:$0xff]  ;;  %8544 = vst [vmem:[#allocation13_spill] sm:$0xff] %v6711_v2  ;;  %v1181_v56 = vsub.f32 %v6625_v52, %v8545_v13  ;;  %v6718_v11 = vpack.c.bf16 %v1175_v30, %v1168_v4  ;;  %v8552_v36 = vand.u32 4294901760, %v6711_v2 }
  0x78   :  { %5309 = vmatprep.subr.bf16.mxu1 %v8519_v32  ;;  %8541 = vst [vmem:[#allocation10_spill] sm:$0xff] %v6694_v39  ;;  %v6706_v32 = vld [vmem:[%s8297_s1 + $0x188] sm:$0xff]  ;;  %8543 = vst [vmem:[#allocation12_spill] sm:$0xff] %v6709_v37  ;;  %v6720_v16 = vpack.c.bf16 %v1057_v22, %v1054_v48  ;;  %v1188_v62 = vsub.f32 %v6627_v61, %v8546_v60  ;;  %v1111_v20 = vand.u32 4294901760, %v82_v31  ;;  %v6736_v30 = vld [vmem:[%s8297_s1 + $0x190] sm:$0xff]  ;;  %v8547_v60 = vand.u32 4294901760, %v6662_v9 }
  0x79   :  { %v6726_v49 = vsub.f32 %v63_v18, %v1054_v48  ;;  %v6728_v29 = vsub.f32 %v64_v58, %v1057_v22  ;;  %v5356_v13 = vpack.c.bf16 %v1301_v21, %v1294_v24  ;;  %v6747_v18 = vld [vmem:[%s8297_s1 + $0x218] sm:$0xff]  ;;  %v6752_v58 = vld [vmem:[%s8297_s1 + $0x220] sm:$0xff]  ;;  %v1182_v21 = vand.u32 4294901760, %v1181_v56  ;;  %v151_v22 = vld [vmem:[%s8298_s0 + $0x10] sm:$0xff] }
  0x7a   :  { %5319 = vmatpush3.bf16.msra.mxu0 %v6522_v12  ;;  %v6756_v24 = vsub.f32 %v81_v42, %v1108_v53  ;;  %v1189_v48 = vand.u32 4294901760, %v1188_v62  ;;  %v6765_v4 = vpack.c.bf16 %v1111_v20, %v1108_v53  ;;  %v1063_v42 = vand.u32 4294901760, %v6736_v30  ;;  %v6781_v53 = vld [vmem:[%s8297_s1 + $0x198] sm:$0xff] }
  0x7b   :  { %5311 = vmatpush3.bf16.msra.mxu1 %v8520_v26  ;;  %5321 = vmatprep.subr.bf16.mxu0 %v6550_v23  ;;  %v1307_v26 = vsub.f32 %v6635_v34, %v8360_v51  ;;  %v8548_v51 = vand.u32 4294901760, %v6706_v32  ;;  %v8551_v23 = vand.u32 4294901760, %v6709_v37 }
  0x7c   :  { %5345 = vmatprep.subr.bf16.mxu1 %v6601_v43  ;;  %v1314_v43 = vsub.f32 %v6662_v9, %v8547_v60 }
  0x7d   :  { %v1308_v56 = vand.u32 4294901760, %v1307_v26  ;;  %v6774_v60 = vsub.f32 %v6706_v32, %v8548_v51  ;;  %v8549_v51 = vand.u32 4294901760, %v6680_v5  ;;  %v1321_v12 = vsub.f32 %v6709_v37, %v8551_v23 }
  0x7e   :  { %1018 = vmatmul.mubr.f32.vlgmr.msra.gmra.mrb[4].mxu1 %v6267_v57  ;;  %5323 = vmatpush3.bf16.msra.mxu0 %v6569_v0  ;;  %v6767_v57 = vsub.f32 %v82_v31, %v1111_v20  ;;  %v1114_v0 = vand.u32 4294901760, %v6747_v18  ;;  %v6786_v31 = vld [vmem:[%s8297_s1 + $0x1a0] sm:$0xff]  ;;  %v8550_v20 = vand.u32 4294901760, %v6694_v39 }
  0x7f   :  { %5347 = vmatpush3.bf16.msra.mxu1 %v6603_v10  ;;  %5325 = vmatprep.subr.bf16.mxu0 %v6583_v41  ;;  %v1117_v10 = vand.u32 4294901760, %v6752_v58  ;;  %v1195_v62 = vsub.f32 %v6680_v5, %v8549_v51  ;;  %v6795_v41 = vand.u32 4294901760, %v151_v22  ;;  %v1069_v23 = vand.u32 4294901760, %v6786_v31 }
  0x80   :  { %5349 = vmatprep.subr.bf16.mxu1 %v6654_v8  ;;  %1360 = vmatprep.mubr.f32.mxu1 %v6524_v44  ;;  %v1315_v8 = vand.u32 4294901760, %v1314_v43  ;;  %v1202_v26 = vsub.f32 %v6694_v39, %v8550_v20  ;;  %v1328_v43 = vsub.f32 %v6711_v2, %v8552_v36  ;;  %v5358_v20 = vpack.c.bf16 %v1189_v48, %v1182_v21 }
  0x81   :  { %v6809_v39 = vsub.f32 %v6736_v30, %v1063_v42  ;;  %v6815_v36 = vsub.f32 %v6747_v18, %v1114_v0  ;;  %v6818_v44 = vsub.f32 %v6752_v58, %v1117_v10  ;;  %v8385_v51 = vand.u32 4294901760, %v6767_v57 }
  0x82   :  { %5327 = vmatpush3.bf16.msra.mxu0 %v6609_v28  ;;  %v1066_v28 = vand.u32 4294901760, %v6781_v53  ;;  %v5360_v48 = vpack.c.bf16 %v1315_v8, %v1308_v56  ;;  %v1196_v21 = vand.u32 4294901760, %v1195_v62  ;;  %v1203_v30 = vand.u32 4294901760, %v1202_v26 }
  0x83   :  { %5351 = vmatpush3.bf16.msra.mxu1 %v6678_v59  ;;  %5329 = vmatprep.subr.bf16.mxu0 %v6656_v35  ;;  %v6823_v35 = vsub.f32 %v151_v22, %v6795_v41  ;;  %v1322_v2 = vand.u32 4294901760, %v1321_v12  ;;  %v8553_v18 = vand.u32 4294901760, %v6726_v49  ;;  %v8554_v58 = vand.u32 4294901760, %v6728_v29 }
  0x84   :  { %5353 = vmatprep.subr.bf16.mxu1 %v6690_v7  ;;  %v1329_v7 = vand.u32 4294901760, %v1328_v43  ;;  %v6835_v56 = vsub.f32 %v6781_v53, %v1066_v28  ;;  %v6838_v22 = vsub.f32 %v6786_v31, %v1069_v23  ;;  %v8555_v62 = vand.u32 4294901760, %v6756_v24 }
  0x85   :  { %v1209_v37 = vsub.f32 %v6726_v49, %v8553_v18  ;;  %v1216_v59 = vsub.f32 %v6728_v29, %v8554_v58  ;;  %v1348_v43 = vand.u32 4294901760, %v6815_v36  ;;  %v8556_v31 = vand.u32 4294901760, %v6706_v32 }
  0x86   :  { %5331 = vmatpush3.bf16.msra.mxu0 %v6692_v50  ;;  %v1335_v26 = vsub.f32 %v6756_v24, %v8555_v62  ;;  %v6854_v58 = vpack.c.bf16 %v1117_v10, %v1114_v0  ;;  %v5362_v8 = vpack.c.bf16 %v1203_v30, %v1196_v21  ;;  %v5364_v62 = vpack.c.bf16 %v1329_v7, %v1322_v2 }
  0x87   :  { %5355 = vmatpush3.bf16.msra.mxu1 %v6718_v11  ;;  %5333 = vmatprep.subr.bf16.mxu0 %v6700_v6  ;;  %v1342_v11 = vsub.f32 %v6767_v57, %v8385_v51  ;;  %v6852_v18 = vpack.c.bf16 %v1063_v42, %v8556_v31  ;;  %v1210_v12 = vand.u32 4294901760, %v1209_v37  ;;  %v1217_v6 = vand.u32 4294901760, %v1216_v59 }
  0x88   :  { %5357 = vmatprep.subr.bf16.mxu1 %v5356_v13  ;;  %v1127_v13 = vand.u32 4294901760, %v6823_v35  ;;  %v8557_v51 = vand.u32 4294901760, %v6774_v60  ;;  %v8558_v32 = vand.u32 4294901760, %v6809_v39  ;;  %v8386_v42 = vand.u32 4294901760, %v6835_v56 }
  0x89   :  { %v8387_v10 = vand.u32 4294901760, %v6838_v22  ;;  %v1336_v21 = vand.u32 4294901760, %v1335_v26  ;;  %v1343_v2 = vand.u32 4294901760, %v1342_v11  ;;  %v1349_v37 = vsub.f32 %v6815_v36, %v1348_v43 }
  0x8a   :  { %5335 = vmatpush3.bf16.msra.mxu0 %v6720_v16  ;;  %v1223_v53 = vsub.f32 %v6774_v60, %v8557_v51  ;;  %v1230_v0 = vsub.f32 %v6809_v39, %v8558_v32  ;;  %v1128_v51 = vsub.f32 %v6823_v35, %v1127_v13  ;;  %v6877_v30 = vpack.c.bf16 %v1069_v23, %v1066_v28 }
  0x8b   :  { %5359 = vmatpush3.bf16.msra.mxu1 %v5358_v20  ;;  %5337 = vmatprep.subr.bf16.mxu0 %v6765_v4  ;;  %v8559_v20 = vand.u32 4294901760, %v6818_v44  ;;  %v5366_v7 = vpack.c.bf16 %v1217_v6, %v1210_v12  ;;  %v1237_v31 = vsub.f32 %v6835_v56, %v8386_v42  ;;  %v1244_v32 = vsub.f32 %v6838_v22, %v8387_v10 }
  0x8c   :  { %5361 = vmatprep.subr.bf16.mxu1 %v5360_v48  ;;  %v5376_v48 = vpack.c.bf16 %v6445_v55, %v6437_v33  ;;  %v1224_v26 = vand.u32 4294901760, %v1223_v53  ;;  %v1231_v11 = vand.u32 4294901760, %v1230_v0  ;;  %v5368_v28 = vpack.c.bf16 %v1343_v2, %v1336_v21 }
  0x8d   :  { %v1356_v59 = vsub.f32 %v6818_v44, %v8559_v20  ;;  %v1350_v23 = vand.u32 4294901760, %v1349_v37  ;;  %v1129_v12 = vand.u32 4294901760, %v1128_v51  ;;  %v5380_v0 = vpack.c.bf16 %v6520_v14, %v6518_v15  ;;  %v8560_v51 = vld [vmem:[#allocation2_spill] sm:$0xff] }
  0x8e   :  { %5339 = vmatpush3.bf16.msra.mxu0 %v6852_v18  ;;  %v5370_v53 = vpack.c.bf16 %v1231_v11, %v1224_v26  ;;  %v1238_v20 = vand.u32 4294901760, %v1237_v31  ;;  %v1245_v42 = vand.u32 4294901760, %v1244_v32  ;;  %v5384_v2 = vpack.c.bf16 %v6554_v47, %v6552_v17  ;;  %v8563_v11 = vld [vmem:[#allocation3_spill] sm:$0xff]  ;;  %v8564_v31 = vld [vmem:[#allocation12_spill] sm:$0xff]  ;;  %v8565_v32 = vld [vmem:[#allocation13_spill] sm:$0xff] }
  0x8f   :  { %5363 = vmatpush3.bf16.msra.mxu1 %v5362_v8  ;;  %5341 = vmatprep.subr.bf16.mxu0 %v6854_v58  ;;  %v1357_v6 = vand.u32 4294901760, %v1356_v59  ;;  %v5378_v8 = vpack.c.bf16 %v6449_v63, %v6447_v46  ;;  %v5386_v37 = vpack.c.bf16 %v6573_v3, %v6571_v45  ;;  %v5388_v59 = vpack.c.bf16 %v6594_v27, %v6592_v25 }
  0x90   :  { %5365 = vmatprep.subr.bf16.mxu1 %v5364_v62  ;;  %v5382_v62 = vpack.c.bf16 %v6538_v38, %v6527_v40  ;;  %v5374_v21 = vpack.c.bf16 %v1245_v42, %v1238_v20  ;;  %v5390_v42 = vpack.c.bf16 %v6627_v61, %v6625_v52  ;;  %v5404_v20 = vpack.c.bf16 %v6818_v44, %v6815_v36 }
  0x91   :  { %v5372_v10 = vpack.c.bf16 %v1357_v6, %v1350_v23  ;;  %v8566_v23 = vld [vmem:[#allocation4_spill] sm:$0xff]  ;;  %v5398_v6 = vpack.c.bf16 %v6728_v29, %v6726_v49 }
  0x92   :  { %5343 = vmatpush3.bf16.msra.mxu0 %v6877_v30 }
  0x93   :  { %5367 = vmatpush3.bf16.msra.mxu1 %v5366_v7  ;;  %5377 = vmatprep.subr.bf16.mxu0 %v5376_v48  ;;  %v8561_v7 = vand.u32 4294901760, %v6557_v19  ;;  %v8562_v48 = vld [vmem:[#allocation10_spill] sm:$0xff] }
  0x94   :  { %5369 = vmatprep.subr.bf16.mxu1 %v5368_v28  ;;  %v5394_v26 = vpack.c.bf16 %v8562_v48, %v6680_v5  ;;  %v5396_v28 = vpack.c.bf16 %v8565_v32, %v8564_v31 }
  0x95   :  { %1130 = vmatmul.mubr.f32.vlgmr.msra.gmra.mrb[6].mxu0 %v1129_v12  ;;  %v8567_v12 = vld [vmem:[#allocation5_spill] sm:$0xff] }
  0x96   :  { %5379 = vmatpush3.bf16.msra.mxu0 %v5378_v8  ;;  %1497 = vmatprep.mubr.f32.mxu0 %v6557_v19  ;;  %v5400_v19 = vpack.c.bf16 %v6767_v57, %v6756_v24  ;;  %v8568_v8 = vld [vmem:[#allocation6_spill] sm:$0xff] }
  0x97   :  { %5371 = vmatpush3.bf16.msra.mxu1 %v5370_v53  ;;  %5381 = vmatprep.subr.bf16.mxu0 %v5380_v0  ;;  %v5402_v53 = vpack.c.bf16 %v6809_v39, %v6774_v60  ;;  %v8569_v0 = vld [vmem:[#allocation8_spill] sm:$0xff] }
  0x98   :  { %5373 = vmatprep.subr.bf16.mxu1 %v5372_v10  ;;  %v5392_v10 = vpack.c.bf16 %v6662_v9, %v6635_v34 }
  0x9a   :  { %5383 = vmatpush3.bf16.msra.mxu0 %v5382_v62  ;;  %v8570_v62 = vld [vmem:[#allocation9_spill] sm:$0xff] }
  0x9b   :  { %5375 = vmatpush3.bf16.msra.mxu1 %v5374_v21  ;;  %5385 = vmatprep.subr.bf16.mxu0 %v5384_v2  ;;  %v5406_v21 = vpack.c.bf16 %v6838_v22, %v6835_v56  ;;  %v8571_v2 = vand.u32 4294901760, %v6437_v33  ;;  %v101_v33 = vld [vmem:[%s8297_s1 + $0x2a8] sm:$0xff] }
  0x9c   :  { %5409 = vmatprep.subr.bf16.mxu1 %v6500_v54 }
  0x9e   :  { %1362 = vmatmul.mubr.f32.vlgmr.msra.gmra.mrb[6].mxu1 %v6795_v41  ;;  %5387 = vmatpush3.bf16.msra.mxu0 %v5386_v37  ;;  %v8572_v37 = vand.u32 4294901760, %v6445_v55  ;;  %v8578_v55 = vand.u32 4294901760, %v6527_v40  ;;  %v1934_v40 = vand.u32 4294901760, %v101_v33 }
  0x9f   :  { %5411 = vmatpush3.bf16.msra.mxu1 %v6512_v1  ;;  %5389 = vmatprep.subr.bf16.mxu0 %v5388_v59 }
  0xa0   :  { %5413 = vmatprep.subr.bf16.mxu1 %v8560_v51  ;;  %1604 = vmatprep.mubr.f32.mxu1 %v8561_v7  ;;  %v5440_v59 = vpack.c.bf16 %v8572_v37, %v8571_v2  ;;  %v8575_v7 = vand.u32 4294901760, %v6449_v63  ;;  %v86_v2 = vld [vmem:[%s8297_s1 + $0x230] sm:$0xff] }
  0xa2   :  { %5391 = vmatpush3.bf16.msra.mxu0 %v5390_v42  ;;  %v8573_v42 = vld [vmem:[#allocation11_spill] sm:$0xff] }
  0xa3   :  { %5415 = vmatpush3.bf16.msra.mxu1 %v8563_v11  ;;  %5393 = vmatprep.subr.bf16.mxu0 %v5392_v10  ;;  %v8574_v10 = vand.u32 4294901760, %v6447_v46  ;;  %v8579_v46 = vand.u32 4294901760, %v6538_v38  ;;  %v85_v38 = vld [vmem:[%s8297_s1 + $0x228] sm:$0xff] }
  0xa4   :  { %5417 = vmatprep.subr.bf16.mxu1 %v8566_v23 }
  0xa5   :  { %v5446_v63 = vpack.c.bf16 %v8579_v46, %v8578_v55  ;;  %v8588_v55 = vand.u32 4294901760, %v6627_v61  ;;  %v8592_v61 = vand.u32 4294901760, %v8562_v48  ;;  %v8596_v48 = vand.u32 4294901760, %v6728_v29  ;;  %v154_v29 = vld [vmem:[%s8298_s0 + $0x28] sm:$0xff] }
  0xa6   :  { %5395 = vmatpush3.bf16.msra.mxu0 %v5394_v26  ;;  %v5442_v26 = vpack.c.bf16 %v8575_v7, %v8574_v10  ;;  %v103_v10 = vld [vmem:[%s8297_s1 + $0x2b8] sm:$0xff]  ;;  %v104_v7 = vld [vmem:[%s8297_s1 + $0x2c0] sm:$0xff] }
  0xa7   :  { %5419 = vmatpush3.bf16.msra.mxu1 %v8567_v12  ;;  %5397 = vmatprep.subr.bf16.mxu0 %v5396_v28  ;;  %v8576_v28 = vand.u32 4294901760, %v6518_v15  ;;  %v8581_v15 = vand.u32 4294901760, %v6552_v17  ;;  %v8583_v17 = vand.u32 4294901760, %v6571_v45 }
  0xa8   :  { %5421 = vmatprep.subr.bf16.mxu1 %v8568_v8 }
  0xaa   :  { %5399 = vmatpush3.bf16.msra.mxu0 %v5398_v6  ;;  %v8577_v6 = vand.u32 4294901760, %v6520_v14  ;;  %v8582_v14 = vand.u32 4294901760, %v6554_v47  ;;  %v8584_v47 = vand.u32 4294901760, %v6573_v3  ;;  %v1889_v3 = vand.u32 4294901760, %v86_v2 }
  0xab   :  { %5423 = vmatpush3.bf16.msra.mxu1 %v8569_v0  ;;  %5401 = vmatprep.subr.bf16.mxu0 %v5400_v19 }
  0xac   :  { %5425 = vmatprep.subr.bf16.mxu1 %v8570_v62  ;;  %v5444_v19 = vpack.c.bf16 %v8577_v6, %v8576_v28  ;;  %v5450_v37 = vpack.c.bf16 %v8584_v47, %v8583_v17  ;;  %v8586_v28 = vand.u32 4294901760, %v6594_v27  ;;  %v1886_v6 = vand.u32 4294901760, %v85_v38 }
  0xad   :  { %v1943_v47 = vand.u32 4294901760, %v104_v7 }
  0xae   :  { %5403 = vmatpush3.bf16.msra.mxu0 %v5402_v53  ;;  %v8580_v53 = vld [vmem:[#allocation7_spill] sm:$0xff] }
  0xaf   :  { %5427 = vmatpush3.bf16.msra.mxu1 %v6692_v50  ;;  %5405 = vmatprep.subr.bf16.mxu0 %v5404_v20  ;;  %v5448_v20 = vpack.c.bf16 %v8582_v14, %v8581_v15  ;;  %v8590_v15 = vand.u32 4294901760, %v6662_v9  ;;  %v8594_v9 = vand.u32 4294901760, %v8565_v32  ;;  %v8597_v32 = vand.u32 4294901760, %v6756_v24 }
  0xb0   :  { %5429 = vmatprep.subr.bf16.mxu1 %v8573_v42  ;;  %v8599_v24 = vand.u32 4294901760, %v6774_v60  ;;  %v8603_v60 = vand.u32 4294901760, %v6838_v22  ;;  %v7078_v22 = vand.u32 4294901760, %v154_v29 }
  0xb2   :  { %5407 = vmatpush3.bf16.msra.mxu0 %v5406_v21  ;;  %v102_v21 = vld [vmem:[%s8297_s1 + $0x2b0] sm:$0xff]  ;;  %8605 = vst [vmem:[#allocation10_spill] sm:$0xff] %v7078_v22 }
  0xb3   :  { %5431 = vmatpush3.bf16.msra.mxu1 %v6720_v16  ;;  %5441 = vmatprep.subr.bf16.mxu0 %v5440_v59  ;;  %v1937_v59 = vand.u32 4294901760, %v102_v21 }
  0xb4   :  { %5433 = vmatprep.subr.bf16.mxu1 %v6765_v4 }
  0xb5   :  { %1500 = vmatmul.mubr.f32.vlgmr.msra.gmra.mrb[8].mxu0 %v6823_v35  ;;  %v7035_v35 = vsub.f32 %v85_v38, %v1886_v6 }
  0xb6   :  { %5443 = vmatpush3.bf16.msra.mxu0 %v5442_v26  ;;  %1774 = vmatprep.mubr.f32.mxu0 %v8580_v53  ;;  %v8585_v26 = vand.u32 4294901760, %v6592_v25  ;;  %v87_v25 = vld [vmem:[%s8297_s1 + $0x238] sm:$0xff] }
  0xb7   :  { %5435 = vmatpush3.bf16.msra.mxu1 %v6852_v18  ;;  %5445 = vmatprep.subr.bf16.mxu0 %v5444_v19  ;;  %v8587_v19 = vand.u32 4294901760, %v6625_v52  ;;  %v8591_v52 = vand.u32 4294901760, %v6680_v5  ;;  %v8595_v5 = vand.u32 4294901760, %v6726_v49  ;;  %v1892_v49 = vand.u32 4294901760, %v87_v25 }
  0xb8   :  { %5437 = vmatprep.subr.bf16.mxu1 %v6854_v58  ;;  %v5452_v45 = vpack.c.bf16 %v8586_v28, %v8585_v26  ;;  %v105_v26 = vld [vmem:[%s8297_s1 + $0x2c8] sm:$0xff]  ;;  %v106_v28 = vld [vmem:[%s8297_s1 + $0x2d0] sm:$0xff] }
  0xb9   :  { %v5454_v46 = vpack.c.bf16 %v8588_v55, %v8587_v19  ;;  %v5458_v27 = vpack.c.bf16 %v8592_v61, %v8591_v52  ;;  %v8598_v19 = vand.u32 4294901760, %v6767_v57  ;;  %v8600_v57 = vand.u32 4294901760, %v6809_v39 }
  0xba   :  { %5447 = vmatpush3.bf16.msra.mxu0 %v5446_v63  ;;  %v8589_v63 = vand.u32 4294901760, %v6635_v34  ;;  %v8593_v34 = vand.u32 4294901760, %v8564_v31  ;;  %v7024_v31 = vpack.c.bf16 %v8596_v48, %v8595_v5  ;;  %v1949_v38 = vand.u32 4294901760, %v106_v28 }
  0xbb   :  { %5439 = vmatpush3.bf16.msra.mxu1 %v6877_v30  ;;  %5449 = vmatprep.subr.bf16.mxu0 %v5448_v20  ;;  %v6996_v20 = vsub.f32 %v101_v33, %v1934_v40  ;;  %v1940_v33 = vand.u32 4294901760, %v103_v10  ;;  %v7030_v55 = vpack.c.bf16 %v8598_v19, %v8597_v32  ;;  %v7065_v61 = vsub.f32 %v104_v7, %v1943_v47  ;;  %v107_v7 = vld [vmem:[%s8297_s1 + $0x2d8] sm:$0xff] }
  0xbc   :  { %5473 = vmatprep.subr.bf16.mxu1 %v6500_v54  ;;  %v5456_v14 = vpack.c.bf16 %v8590_v15, %v8589_v63  ;;  %v88_v54 = vld [vmem:[%s8297_s1 + $0x240] sm:$0xff]  ;;  %v5460_v17 = vpack.c.bf16 %v8594_v9, %v8593_v34  ;;  %v7032_v63 = vsub.f32 %v102_v21, %v1937_v59  ;;  %v7047_v21 = vpack.c.bf16 %v8600_v57, %v8599_v24 }
  0xbd   :  { %v7063_v39 = vsub.f32 %v103_v10, %v1940_v33  ;;  %v7069_v34 = vpack.c.bf16 %v1889_v3, %v1886_v6  ;;  %v108_v6 = vld [vmem:[%s8297_s1 + $0x2e0] sm:$0xff]  ;;  %v8390_v5 = vand.u32 4294901760, %v7065_v61  ;;  %v7109_v48 = vsub.f32 %v154_v29, %v7078_v22 }
  0xbe   :  { %1608 = vmatmul.mubr.f32.vlgmr.msra.gmra.mrb[8].mxu1 %v1127_v13  ;;  %5451 = vmatpush3.bf16.msra.mxu0 %v5450_v37  ;;  %v7037_v13 = vsub.f32 %v86_v2, %v1889_v3  ;;  %v1895_v37 = vand.u32 4294901760, %v88_v54  ;;  %v8399_v2 = vand.u32 4294901760, %v6996_v20  ;;  %v8397_v36 = vand.u32 4294901760, %v7032_v63 }
  0xbf   :  { %5475 = vmatpush3.bf16.msra.mxu1 %v6512_v1  ;;  %5453 = vmatprep.subr.bf16.mxu0 %v5452_v45  ;;  %v1946_v1 = vand.u32 4294901760, %v105_v26  ;;  %v8601_v45 = vand.u32 4294901760, %v6818_v44  ;;  %8604 = vst [vmem:[#allocation2_spill] sm:$0xff] %v7069_v34  ;;  %v89_v44 = vld [vmem:[%s8297_s1 + $0x248] sm:$0xff] }
  0xc0   :  { %5477 = vmatprep.subr.bf16.mxu1 %v8560_v51  ;;  %1878 = vmatprep.mubr.f32.mxu1 %v8580_v53  ;;  %v8602_v51 = vand.u32 4294901760, %v6835_v56  ;;  %v7067_v53 = vpack.c.bf16 %v1937_v59, %v1934_v40  ;;  %v90_v56 = vld [vmem:[%s8297_s1 + $0x250] sm:$0xff]  ;;  %v7083_v40 = vpack.c.bf16 %v1895_v37, %v1892_v49  ;;  %v8396_v59 = vand.u32 4294901760, %v7035_v35 }
  0xc1   :  { %v7055_v15 = vpack.c.bf16 %v8601_v45, %v1348_v43  ;;  %v7081_v43 = vpack.c.bf16 %v1943_v47, %v1940_v33  ;;  %v8392_v10 = vand.u32 4294901760, %v7037_v13  ;;  %v7096_v3 = vsub.f32 %v88_v54, %v1895_v37 }
  0xc2   :  { %v7061_v52 = vpack.c.bf16 %v8603_v60, %v8602_v51  ;;  %5455 = vmatpush3.bf16.msra.mxu0 %v5454_v46  ;;  %8607 = vst [vmem:[#allocation12_spill] sm:$0xff] %v7083_v40  ;;  %v7098_v46 = vpack.c.bf16 %v1949_v38, %v1946_v1  ;;  %v1898_v9 = vand.u32 4294901760, %v89_v44  ;;  %v1901_v33 = vand.u32 4294901760, %v90_v56 }
  0xc3   :  { %5479 = vmatpush3.bf16.msra.mxu1 %v8563_v11  ;;  %5457 = vmatprep.subr.bf16.mxu0 %v5456_v14  ;;  %8606 = vst [vmem:[#allocation3_spill] sm:$0xff] %v7081_v43  ;;  %v7094_v11 = vsub.f32 %v87_v25, %v1892_v49  ;;  %v2113_v14 = vsub.f32 %v6996_v20, %v8399_v2  ;;  %v8391_v47 = vand.u32 4294901760, %v7063_v39  ;;  %v1952_v25 = vand.u32 4294901760, %v107_v7 }
  0xc4   :  { %5481 = vmatprep.subr.bf16.mxu1 %v8566_v23  ;;  %8608 = vst [vmem:[#allocation13_spill] sm:$0xff] %v7098_v46  ;;  %v2120_v23 = vsub.f32 %v7032_v63, %v8397_v36  ;;  %v1955_v54 = vand.u32 4294901760, %v108_v6  ;;  %v7112_v32 = vsub.f32 %v105_v26, %v1946_v1  ;;  %v2001_v19 = vsub.f32 %v7035_v35, %v8396_v59 }
  0xc5   :  { %v7121_v49 = vsub.f32 %v106_v28, %v1949_v38  ;;  %v2114_v37 = vand.u32 4294901760, %v2113_v14  ;;  %v8389_v26 = vand.u32 4294901760, %v7096_v3  ;;  %v7128_v29 = vpack.c.bf16 %v1901_v33, %v1898_v9  ;;  %v92_v28 = vld [vmem:[%s8297_s1 + $0x260] sm:$0xff] }
  0xc6   :  { %5459 = vmatpush3.bf16.msra.mxu0 %v5458_v27  ;;  %v2008_v27 = vsub.f32 %v7037_v13, %v8392_v10  ;;  %v7130_v24 = vsub.f32 %v89_v44, %v1898_v9  ;;  %v2127_v57 = vsub.f32 %v7063_v39, %v8391_v47  ;;  %v2121_v1 = vand.u32 4294901760, %v2120_v23 }
  0xc7   :  { %5483 = vmatpush3.bf16.msra.mxu1 %v8567_v12  ;;  %5461 = vmatprep.subr.bf16.mxu0 %v5460_v17  ;;  %v91_v12 = vld [vmem:[%s8297_s1 + $0x258] sm:$0xff]  ;;  %v8388_v17 = vand.u32 4294901760, %v7094_v11  ;;  %8609 = vst [vmem:[#allocation4_spill] sm:$0xff] %v7128_v29  ;;  %v7142_v38 = vsub.f32 %v90_v56, %v1901_v33  ;;  %v7144_v45 = vpack.c.bf16 %v1955_v54, %v1952_v25  ;;  %v8404_v51 = vand.u32 4294901760, %v7109_v48  ;;  %v110_v56 = vld [vmem:[%s8297_s1 + $0x2f0] sm:$0xff] }
  0xc8   :  { %5485 = vmatprep.subr.bf16.mxu1 %v8568_v8  ;;  %v2134_v8 = vsub.f32 %v7065_v61, %v8390_v5  ;;  %v2002_v60 = vand.u32 4294901760, %v2001_v19  ;;  %v2009_v44 = vand.u32 4294901760, %v2008_v27  ;;  %v7149_v14 = vsub.f32 %v107_v7, %v1952_v25 }
  0xc9   :  { %8610 = vst [vmem:[#allocation5_spill] sm:$0xff] %v7144_v45  ;;  %v1904_v9 = vand.u32 4294901760, %v91_v12  ;;  %v7158_v33 = vsub.f32 %v108_v6, %v1955_v54  ;;  %v2022_v7 = vsub.f32 %v7096_v3, %v8389_v26  ;;  %v2128_v23 = vand.u32 4294901760, %v2127_v57 }
  0xca   :  { %5463 = vmatpush3.bf16.msra.mxu0 %v7024_v31  ;;  %v109_v31 = vld [vmem:[%s8297_s1 + $0x2e8] sm:$0xff]  ;;  %v2135_v25 = vand.u32 4294901760, %v2134_v8  ;;  %v8394_v19 = vand.u32 4294901760, %v7112_v32  ;;  %v8393_v27 = vand.u32 4294901760, %v7121_v49  ;;  %v1961_v54 = vand.u32 4294901760, %v110_v56 }
  0xcb   :  { %5487 = vmatpush3.bf16.msra.mxu1 %v8569_v0  ;;  %5465 = vmatprep.subr.bf16.mxu0 %v7030_v55  ;;  %v1907_v0 = vand.u32 4294901760, %v92_v28  ;;  %v2015_v55 = vsub.f32 %v7094_v11, %v8388_v17  ;;  %v1958_v6 = vand.u32 4294901760, %v109_v31  ;;  %v93_v17 = vld [vmem:[%s8297_s1 + $0x268] sm:$0xff]  ;;  %v1984_v26 = vsub.f32 %v7109_v48, %v8404_v51 }
  0xcc   :  { %5489 = vmatprep.subr.bf16.mxu1 %v8570_v62  ;;  %v7169_v62 = vpack.c.bf16 %v2121_v1, %v2114_v37  ;;  %v7179_v57 = vpack.c.bf16 %v2009_v44, %v2002_v60  ;;  %v7181_v8 = vsub.f32 %v91_v12, %v1904_v9  ;;  %v8398_v37 = vand.u32 4294901760, %v7142_v38  ;;  %v111_v44 = vld [vmem:[%s8297_s1 + $0x2f8] sm:$0xff] }
  0xcd   :  { %v7186_v1 = vpack.c.bf16 %v1907_v0, %v1904_v9  ;;  %v7188_v5 = vsub.f32 %v92_v28, %v1907_v0  ;;  %v2016_v47 = vand.u32 4294901760, %v2015_v55  ;;  %v2023_v10 = vand.u32 4294901760, %v2022_v7  ;;  %v112_v9 = vld [vmem:[%s8297_s1 + $0x300] sm:$0xff] }
  0xce   :  { %5467 = vmatpush3.bf16.msra.mxu0 %v7047_v21  ;;  %v8395_v21 = vand.u32 4294901760, %v7130_v24  ;;  %v2141_v12 = vsub.f32 %v7112_v32, %v8394_v19  ;;  %v1910_v60 = vand.u32 4294901760, %v93_v17  ;;  %v7202_v28 = vpack.c.bf16 %v1961_v54, %v1958_v6 }
  0xcf   :  { %5491 = vmatpush3.bf16.msra.mxu1 %v6692_v50  ;;  %5469 = vmatprep.subr.bf16.mxu0 %v7055_v15  ;;  %8611 = vst [vmem:[#allocation6_spill] sm:$0xff] %v7186_v1  ;;  %v94_v50 = vld [vmem:[%s8297_s1 + $0x270] sm:$0xff]  ;;  %v7193_v15 = vpack.c.bf16 %v2135_v25, %v2128_v23  ;;  %v8400_v0 = vand.u32 4294901760, %v7149_v14  ;;  %v8401_v55 = vand.u32 4294901760, %v7158_v33  ;;  %v1985_v7 = vand.u32 4294901760, %v1984_v26 }
  0xd0   :  { %5493 = vmatprep.subr.bf16.mxu1 %v8573_v42  ;;  %v2148_v42 = vsub.f32 %v7121_v49, %v8393_v27  ;;  %8612 = vst [vmem:[#allocation8_spill] sm:$0xff] %v7202_v28  ;;  %v1913_v23 = vand.u32 4294901760, %v94_v50  ;;  %v2029_v25 = vsub.f32 %v7130_v24, %v8395_v21  ;;  %v2036_v27 = vsub.f32 %v7142_v38, %v8398_v37 }
  0xd1   :  { %v7223_v19 = vpack.c.bf16 %v2023_v10, %v2016_v47  ;;  %v7225_v26 = vsub.f32 %v110_v56, %v1961_v54  ;;  %v2142_v21 = vand.u32 4294901760, %v2141_v12  ;;  %v1964_v36 = vand.u32 4294901760, %v111_v44 }
  0xd2   :  { %5471 = vmatpush3.bf16.msra.mxu0 %v7061_v52  ;;  %v7214_v52 = vsub.f32 %v109_v31, %v1958_v6  ;;  %v8402_v31 = vand.u32 4294901760, %v7181_v8  ;;  %v8403_v6 = vand.u32 4294901760, %v7188_v5  ;;  %v2149_v59 = vand.u32 4294901760, %v2148_v42 }
  0xd3   :  { %5495 = vmatpush3.bf16.msra.mxu1 %v6720_v16  ;;  %5505 = vmatprep.subr.bf16.mxu0 %v7067_v53  ;;  %v95_v16 = vld [vmem:[%s8297_s1 + $0x278] sm:$0xff]  ;;  %v1967_v37 = vand.u32 4294901760, %v112_v9  ;;  %v7237_v10 = vsub.f32 %v93_v17, %v1910_v60  ;;  %v2155_v47 = vsub.f32 %v7149_v14, %v8400_v0  ;;  %v2162_v56 = vsub.f32 %v7158_v33, %v8401_v55 }
  0xd4   :  { %5497 = vmatprep.subr.bf16.mxu1 %v6765_v4  ;;  %v96_v4 = vld [vmem:[%s8297_s1 + $0x280] sm:$0xff]  ;;  %v7247_v54 = vpack.c.bf16 %v1913_v23, %v1910_v60  ;;  %v2030_v12 = vand.u32 4294901760, %v2029_v25  ;;  %v2037_v42 = vand.u32 4294901760, %v2036_v27  ;;  %v1916_v2 = vand.u32 4294901760, %v95_v16  ;;  %v114_v27 = vld [vmem:[%s8297_s1 + $0x310] sm:$0xff] }
  0xd5   :  { %1776 = vmatmul.mubr.f32.vlgmr.msra.gmra.mrb[10].mxu0 %v6795_v41  ;;  %v1919_v17 = vand.u32 4294901760, %v96_v4  ;;  %v2043_v0 = vsub.f32 %v7181_v8, %v8402_v31  ;;  %v8409_v60 = vand.u32 4294901760, %v7214_v52  ;;  %v7265_v25 = vsub.f32 %v94_v50, %v1913_v23  ;;  %v7284_v31 = vld [vmem:[%s8297_s1 + $0x288] sm:$0xff] }
  0xd6   :  { %5507 = vmatpush3.bf16.msra.mxu0 %v7069_v34  ;;  %1986 = vmatprep.mubr.f32.mxu0 %v1985_v7  ;;  %v2050_v7 = vsub.f32 %v7188_v5, %v8403_v6  ;;  %v7267_v55 = vpack.c.bf16 %v1967_v37, %v1964_v36  ;;  %v7271_v6 = vsub.f32 %v111_v44, %v1964_v36  ;;  %v2163_v34 = vand.u32 4294901760, %v2162_v56 }
  0xd7   :  { %5499 = vmatpush3.bf16.msra.mxu1 %v6852_v18  ;;  %5509 = vmatprep.subr.bf16.mxu0 %v7081_v43  ;;  %v113_v18 = vld [vmem:[%s8297_s1 + $0x308] sm:$0xff]  ;;  %v7273_v51 = vsub.f32 %v112_v9, %v1967_v37  ;;  %v2156_v43 = vand.u32 4294901760, %v2155_v47  ;;  %v1973_v23 = vand.u32 4294901760, %v114_v27  ;;  %v7287_v36 = vpack.c.bf16 %v1919_v17, %v1916_v2  ;;  %v7295_v9 = vld [vmem:[%s8297_s1 + $0x290] sm:$0xff] }
  0xd8   :  { %5501 = vmatprep.subr.bf16.mxu1 %v6854_v58  ;;  %v7263_v58 = vpack.c.bf16 %v2149_v59, %v2142_v21  ;;  %8613 = vst [vmem:[#allocation9_spill] sm:$0xff] %v7271_v6  ;;  %v7277_v59 = vpack.c.bf16 %v2037_v42, %v2030_v12  ;;  %v7279_v21 = vsub.f32 %v95_v16, %v1916_v2  ;;  %v1970_v50 = vand.u32 4294901760, %v113_v18  ;;  %v7312_v12 = vld [vmem:[%s8297_s1 + $0x320] sm:$0xff] }
  0xd9   :  { %8614 = vst [vmem:[#allocation11_spill] sm:$0xff] %v7273_v51  ;;  %v2044_v37 = vand.u32 4294901760, %v2043_v0  ;;  %v2051_v44 = vand.u32 4294901760, %v2050_v7  ;;  %v7297_v16 = vsub.f32 %v96_v4, %v1919_v17  ;;  %v8615_v47 = vand.u32 4294901760, %v7225_v26  ;;  %v7307_v0 = vld [vmem:[%s8297_s1 + $0x318] sm:$0xff] }
  0xda   :  { %5511 = vmatpush3.bf16.msra.mxu0 %v7083_v40  ;;  %v5548_v4 = vpack.c.bf16 %v2163_v34, %v2156_v43  ;;  %v1922_v42 = vand.u32 4294901760, %v7284_v31  ;;  %v1925_v34 = vand.u32 4294901760, %v7295_v9  ;;  %v1976_v17 = vand.u32 4294901760, %v7307_v0 }
  0xdb   :  { %5503 = vmatpush3.bf16.msra.mxu1 %v6877_v30  ;;  %5513 = vmatprep.subr.bf16.mxu0 %v7098_v46  ;;  %v2169_v30 = vsub.f32 %v7214_v52, %v8409_v60  ;;  %v2176_v56 = vsub.f32 %v7225_v26, %v8615_v47  ;;  %v153_v47 = vld [vmem:[%s8298_s0 + $0x20] sm:$0xff]  ;;  %v7324_v60 = vpack.c.bf16 %v1973_v23, %v1970_v50  ;;  %v1979_v2 = vand.u32 4294901760, %v7312_v12 }
  0xdc   :  { %5537 = vmatprep.subr.bf16.mxu1 %v7169_v62  ;;  %v7328_v62 = vsub.f32 %v114_v27, %v1973_v23  ;;  %v5550_v43 = vpack.c.bf16 %v2051_v44, %v2044_v37  ;;  %v8617_v23 = vand.u32 4294901760, %v7265_v25  ;;  %v7351_v44 = vand.u32 4294901760, %v153_v47 }
  0xdd   :  { %v2170_v7 = vand.u32 4294901760, %v2169_v30  ;;  %v2177_v27 = vand.u32 4294901760, %v2176_v56  ;;  %v8618_v30 = vand.u32 4294901760, %v7271_v6 }
  0xde   :  { %1880 = vmatmul.mubr.f32.vlgmr.msra.gmra.mrb[10].mxu1 %v6795_v41  ;;  %5515 = vmatpush3.bf16.msra.mxu0 %v7128_v29  ;;  %v7326_v41 = vsub.f32 %v113_v18, %v1970_v50  ;;  %v7342_v18 = vld [vmem:[%s8297_s1 + $0x2a0] sm:$0xff]  ;;  %v2064_v37 = vsub.f32 %v7265_v25, %v8617_v23  ;;  %v8619_v29 = vand.u32 4294901760, %v7273_v51  ;;  %v7365_v23 = vsub.f32 %v7284_v31, %v1922_v42 }
  0xdf   :  { %5539 = vmatpush3.bf16.msra.mxu1 %v7179_v57  ;;  %5517 = vmatprep.subr.bf16.mxu0 %v7144_v45  ;;  %v7337_v57 = vld [vmem:[%s8297_s1 + $0x298] sm:$0xff]  ;;  %v2183_v45 = vsub.f32 %v7271_v6, %v8618_v30  ;;  %v1931_v46 = vand.u32 4294901760, %v7342_v18  ;;  %v8428_v31 = vand.u32 4294901760, %v7328_v62 }
  0xe0   :  { %5541 = vmatprep.subr.bf16.mxu1 %v7193_v15  ;;  %2222 = vmatprep.mubr.f32.mxu1 %v7078_v22  ;;  %v8616_v15 = vand.u32 4294901760, %v7237_v10  ;;  %v2190_v56 = vsub.f32 %v7273_v51, %v8619_v29  ;;  %v1928_v30 = vand.u32 4294901760, %v7337_v57  ;;  %v7374_v29 = vsub.f32 %v7307_v0, %v1976_v17 }
  0xe1   :  { %v5552_v22 = vpack.c.bf16 %v2177_v27, %v2170_v7  ;;  %v7382_v51 = vsub.f32 %v153_v47, %v7351_v44  ;;  %v2184_v6 = vand.u32 4294901760, %v2183_v45  ;;  %v8620_v0 = vand.u32 4294901760, %v7279_v21 }
  0xe2   :  { %v2057_v50 = vsub.f32 %v7237_v10, %v8616_v15  ;;  %5519 = vmatpush3.bf16.msra.mxu0 %v7186_v1  ;;  %v7368_v1 = vsub.f32 %v7295_v9, %v1925_v34  ;;  %v7377_v15 = vsub.f32 %v7312_v12, %v1979_v2  ;;  %v2065_v9 = vand.u32 4294901760, %v2064_v37 }
  0xe3   :  { %5543 = vmatpush3.bf16.msra.mxu1 %v7223_v19  ;;  %5521 = vmatprep.subr.bf16.mxu0 %v7202_v28  ;;  %v2071_v40 = vsub.f32 %v7279_v21, %v8620_v0  ;;  %v8621_v12 = vand.u32 4294901760, %v7297_v16  ;;  %v7394_v7 = vsub.f32 %v7337_v57, %v1928_v30  ;;  %v7397_v47 = vsub.f32 %v7342_v18, %v1931_v46 }
  0xe4   :  { %5545 = vmatprep.subr.bf16.mxu1 %v7263_v58  ;;  %v2058_v28 = vand.u32 4294901760, %v2057_v50  ;;  %v2191_v58 = vand.u32 4294901760, %v2190_v56  ;;  %v8622_v50 = vand.u32 4294901760, %v7326_v41  ;;  %v8430_v57 = vand.u32 4294901760, %v7377_v15 }
  0xe5   :  { %v2078_v19 = vsub.f32 %v7297_v16, %v8621_v12  ;;  %v7409_v0 = vpack.c.bf16 %v1925_v34, %v1922_v42  ;;  %v7411_v18 = vpack.c.bf16 %v1979_v2, %v1976_v17  ;;  %v1989_v12 = vand.u32 4294901760, %v7382_v51 }
  0xe6   :  { %5523 = vmatpush3.bf16.msra.mxu0 %v7247_v54  ;;  %v2197_v37 = vsub.f32 %v7326_v41, %v8622_v50  ;;  %v5556_v27 = vpack.c.bf16 %v2191_v58, %v2184_v6  ;;  %v2072_v45 = vand.u32 4294901760, %v2071_v40  ;;  %v8624_v42 = vand.u32 4294901760, %v7368_v1 }
  0xe7   :  { %5547 = vmatpush3.bf16.msra.mxu1 %v7277_v59  ;;  %5525 = vmatprep.subr.bf16.mxu0 %v7267_v55  ;;  %v2204_v59 = vsub.f32 %v7328_v62, %v8428_v31  ;;  %v2079_v50 = vand.u32 4294901760, %v2078_v19  ;;  %v8623_v31 = vand.u32 4294901760, %v7365_v23  ;;  %v8429_v17 = vand.u32 4294901760, %v7394_v7 }
  0xe8   :  { %5549 = vmatprep.subr.bf16.mxu1 %v5548_v4  ;;  %v5554_v4 = vpack.c.bf16 %v2065_v9, %v2058_v28  ;;  %v2092_v2 = vsub.f32 %v7368_v1, %v8624_v42  ;;  %v8431_v34 = vand.u32 4294901760, %v7397_v47  ;;  %v2198_v28 = vand.u32 4294901760, %v2197_v37 }
  0xe9   :  { %v2085_v56 = vsub.f32 %v7365_v23, %v8623_v31  ;;  %v2205_v6 = vand.u32 4294901760, %v2204_v59  ;;  %v8625_v40 = vand.u32 4294901760, %v7374_v29  ;;  %v2218_v19 = vsub.f32 %v7377_v15, %v8430_v57 }
  0xea   :  { %5527 = vmatpush3.bf16.msra.mxu0 %v7287_v36  ;;  %v1990_v31 = vsub.f32 %v7382_v51, %v1989_v12  ;;  %v7434_v9 = vpack.c.bf16 %v1931_v46, %v1928_v30  ;;  %v5558_v58 = vpack.c.bf16 %v2079_v50, %v2072_v45  ;;  %v2093_v59 = vand.u32 4294901760, %v2092_v2 }
  0xeb   :  { %5551 = vmatpush3.bf16.msra.mxu1 %v5550_v43  ;;  %5529 = vmatprep.subr.bf16.mxu0 %v7324_v60  ;;  %v2211_v43 = vsub.f32 %v7374_v29, %v8625_v40  ;;  %v2086_v37 = vand.u32 4294901760, %v2085_v56  ;;  %v2099_v42 = vsub.f32 %v7394_v7, %v8429_v17  ;;  %v2106_v40 = vsub.f32 %v7397_v47, %v8431_v34 }
  0xec   :  { %5553 = vmatprep.subr.bf16.mxu1 %v5552_v22  ;;  %v5568_v22 = vpack.c.bf16 %v7032_v63, %v6996_v20  ;;  %v5560_v46 = vpack.c.bf16 %v2205_v6, %v2198_v28  ;;  %v2219_v45 = vand.u32 4294901760, %v2218_v19  ;;  %v1991_v50 = vand.u32 4294901760, %v1990_v31  ;;  %v8627_v31 = vld [vmem:[#allocation3_spill] sm:$0xff] }
  0xed   :  { %v2212_v30 = vand.u32 4294901760, %v2211_v43  ;;  %v5562_v56 = vpack.c.bf16 %v2093_v59, %v2086_v37  ;;  %v5572_v2 = vpack.c.bf16 %v7065_v61, %v7063_v39  ;;  %v2100_v17 = vand.u32 4294901760, %v2099_v42  ;;  %v8629_v37 = vld [vmem:[#allocation12_spill] sm:$0xff]  ;;  %v8630_v59 = vld [vmem:[#allocation9_spill] sm:$0xff]  ;;  %v8631_v42 = vld [vmem:[#allocation11_spill] sm:$0xff] }
  0xee   :  { %5531 = vmatpush3.bf16.msra.mxu0 %v7409_v0  ;;  %v2107_v57 = vand.u32 4294901760, %v2106_v40  ;;  %v5576_v6 = vpack.c.bf16 %v7121_v49, %v7112_v32  ;;  %v5578_v43 = vpack.c.bf16 %v7142_v38, %v7130_v24  ;;  %v5580_v19 = vpack.c.bf16 %v7158_v33, %v7149_v14 }
  0xef   :  { %5555 = vmatpush3.bf16.msra.mxu1 %v5554_v4  ;;  %5533 = vmatprep.subr.bf16.mxu0 %v7411_v18  ;;  %v5570_v4 = vpack.c.bf16 %v7037_v13, %v7035_v35  ;;  %v5564_v34 = vpack.c.bf16 %v2219_v45, %v2212_v30  ;;  %v5588_v40 = vpack.c.bf16 %v8631_v42, %v8630_v59  ;;  %v8633_v45 = vld [vmem:[#allocation4_spill] sm:$0xff] }
  0xf0   :  { %5557 = vmatprep.subr.bf16.mxu1 %v5556_v27  ;;  %v5574_v27 = vpack.c.bf16 %v7096_v3, %v7094_v11  ;;  %v5566_v28 = vpack.c.bf16 %v2107_v57, %v2100_v17  ;;  %v5582_v57 = vpack.c.bf16 %v7188_v5, %v7181_v8  ;;  %v8626_v17 = vld [vmem:[#allocation2_spill] sm:$0xff]  ;;  %v5590_v30 = vpack.c.bf16 %v7297_v16, %v7279_v21 }
  0xf2   :  { %5535 = vmatpush3.bf16.msra.mxu0 %v7434_v9 }
  0xf3   :  { %5559 = vmatpush3.bf16.msra.mxu1 %v5558_v58  ;;  %5569 = vmatprep.subr.bf16.mxu0 %v5568_v22  ;;  %v8628_v58 = vand.u32 4294901760, %v7109_v48  ;;  %v5586_v22 = vpack.c.bf16 %v7265_v25, %v7237_v10 }
  0xf4   :  { %5561 = vmatprep.subr.bf16.mxu1 %v5560_v46  ;;  %v8632_v46 = vld [vmem:[#allocation13_spill] sm:$0xff] }
  0xf5   :  { %1992 = vmatmul.mubr.f32.vlgmr.msra.gmra.mrb[12].mxu0 %v1991_v50  ;;  %v8634_v50 = vld [vmem:[#allocation5_spill] sm:$0xff] }
  0xf6   :  { %5571 = vmatpush3.bf16.msra.mxu0 %v5570_v4  ;;  %2359 = vmatprep.mubr.f32.mxu0 %v7109_v48  ;;  %v5592_v48 = vpack.c.bf16 %v7328_v62, %v7326_v41 }
  0xf7   :  { %5563 = vmatpush3.bf16.msra.mxu1 %v5562_v56  ;;  %5573 = vmatprep.subr.bf16.mxu0 %v5572_v2  ;;  %v5594_v2 = vpack.c.bf16 %v7368_v1, %v7365_v23 }
  0xf8   :  { %5565 = vmatprep.subr.bf16.mxu1 %v5564_v34  ;;  %v5584_v34 = vpack.c.bf16 %v7225_v26, %v7214_v52 }
  0xfa   :  { %5575 = vmatpush3.bf16.msra.mxu0 %v5574_v27 }
  0xfb   :  { %5567 = vmatpush3.bf16.msra.mxu1 %v5566_v28  ;;  %5577 = vmatprep.subr.bf16.mxu0 %v5576_v6  ;;  %v8635_v28 = vld [vmem:[#allocation6_spill] sm:$0xff]  ;;  %v5596_v6 = vpack.c.bf16 %v7377_v15, %v7374_v29 }
  0xfc   :  { %5601 = vmatprep.subr.bf16.mxu1 %v7067_v53 }
  0xfe   :  { %2224 = vmatmul.mubr.f32.vlgmr.msra.gmra.mrb[12].mxu1 %v7351_v44  ;;  %5579 = vmatpush3.bf16.msra.mxu0 %v5578_v43  ;;  %v8636_v43 = vld [vmem:[#allocation8_spill] sm:$0xff] }
  0xff   :  { %5603 = vmatpush3.bf16.msra.mxu1 %v8626_v17  ;;  %5581 = vmatprep.subr.bf16.mxu0 %v5580_v19  ;;  %v4179_v19 = vld [vmem:[%s8297_s1 + $0x2] ss:$0 sm:$0xff] }
 0x100   :  { %5605 = vmatprep.subr.bf16.mxu1 %v8627_v31  ;;  %2466 = vmatprep.mubr.f32.mxu1 %v8628_v58  ;;  %v8638_v58 = vand.u32 4294901760, %v7032_v63  ;;  %v8640_v63 = vand.u32 4294901760, %v7037_v13  ;;  %v7528_v13 = vld [vmem:[%s8297_s1 + $0x330] sm:$0xff] }
 0x102   :  { %5583 = vmatpush3.bf16.msra.mxu0 %v5582_v57  ;;  %v5598_v57 = vpack.c.bf16 %v7397_v47, %v7394_v7 }
 0x103   :  { %5607 = vmatpush3.bf16.msra.mxu1 %v8629_v37  ;;  %5585 = vmatprep.subr.bf16.mxu0 %v5584_v34  ;;  %v8637_v34 = vand.u32 4294901760, %v6996_v20  ;;  %v8639_v20 = vand.u32 4294901760, %v7035_v35 }
 0x104   :  { %5609 = vmatprep.subr.bf16.mxu1 %v8632_v46 }
 0x106   :  { %5587 = vmatpush3.bf16.msra.mxu0 %v5586_v22  ;;  %v5632_v22 = vpack.c.bf16 %v8638_v58, %v8637_v34  ;;  %v8641_v34 = vand.u32 4294901760, %v7063_v39 }
 0x107   :  { %5611 = vmatpush3.bf16.msra.mxu1 %v8633_v45  ;;  %5589 = vmatprep.subr.bf16.mxu0 %v5588_v40  ;;  %v7501_v40 = vld [vmem:[%s8297_s1 + $0x3a8] sm:$0xff] }
 0x108   :  { %5613 = vmatprep.subr.bf16.mxu1 %v8634_v50  ;;  %v4216_v4 = vpop.f32.mrb[0].mxu0  ;;  %v8435_v58 = vand.u32 4294901760, %v7501_v40 }
 0x109   :  { %v4217_v56 = vpop.f32.mrb[1].mxu0 }
 0x10a   :  { %5591 = vmatpush3.bf16.msra.mxu0 %v5590_v30  ;;  %v4218_v27 = vadd.f32 %v4217_v56, %v4216_v4  ;;  %v7506_v4 = vld [vmem:[%s8297_s1 + $0x3b0] sm:$0xff] }
 0x10b   :  { %5615 = vmatpush3.bf16.msra.mxu1 %v8635_v28  ;;  %5593 = vmatprep.subr.bf16.mxu0 %v5592_v48  ;;  %v8434_v35 = vand.u32 4294901760, %v7506_v4 }
 0x10c   :  { %5617 = vmatprep.subr.bf16.mxu1 %v8636_v43  ;;  %v270_v30 = vadd.f32 %v4218_v27, %v4179_v19  ;;  %v8642_v27 = vand.u32 4294901760, %v7065_v61  ;;  %v8643_v61 = vand.u32 4294901760, %v7094_v11  ;;  %v8432_v11 = vand.u32 4294901760, %v7528_v13 }
 0x10e   :  { %5595 = vmatpush3.bf16.msra.mxu0 %v5594_v2  ;;  %v5634_v2 = vpack.c.bf16 %v8640_v63, %v8639_v20  ;;  %v5636_v19 = vpack.c.bf16 %v8642_v27, %v8641_v34  ;;  %v8646_v63 = vand.u32 4294901760, %v7112_v32  ;;  %v7559_v32 = vld [vmem:[%s8297_s1 + $0x3b8] sm:$0xff]  ;;  %v8648_v34 = vand.u32 4294901760, %v7130_v24 }
 0x10f   :  { %5619 = vmatpush3.bf16.msra.mxu1 %v7247_v54  ;;  %5597 = vmatprep.subr.bf16.mxu0 %v5596_v6  ;;  %v8649_v27 = vand.u32 4294901760, %v7142_v38  ;;  %v7586_v38 = vsub.f32 %v7528_v13, %v8432_v11  ;;  %v8654_v11 = vand.u32 4294901760, %v7214_v52  ;;  %v8660_v52 = vand.u32 4294901760, %v7279_v21  ;;  %v138_v21 = vld [vmem:[%s8297_s1 + $0x3d0] sm:$0xff] }
 0x110   :  { %5621 = vmatprep.subr.bf16.mxu1 %v7267_v55 }
 0x111   :  { %v4251_v48 = vpop.f32.mrb[0].mxu1 }
 0x112   :  { %v4252_v56 = vpop.f32.mrb[1].mxu1  ;;  %5599 = vmatpush3.bf16.msra.mxu0 %v5598_v57  ;;  %v7521_v57 = vld [vmem:[%s8297_s1 + $0x328] sm:$0xff] }
 0x113   :  { %v4253_v6 = vadd.f32 %v4252_v56, %v4251_v48  ;;  %5623 = vmatpush3.bf16.msra.mxu1 %v7287_v36  ;;  %5633 = vmatprep.subr.bf16.mxu0 %v5632_v22  ;;  %v8644_v22 = vand.u32 4294901760, %v7096_v3  ;;  %v8645_v56 = vld [vmem:[#allocation10_spill] sm:$0xff]  ;;  %v8433_v20 = vand.u32 4294901760, %v7521_v57  ;;  %v7554_v3 = vsub.f32 %v7506_v4, %v8434_v35 }
 0x114   :  { %5625 = vmatprep.subr.bf16.mxu1 %v7324_v60 }
 0x115   :  { %v7530_v39 = vadd.f32 %v4253_v6, %v270_v30  ;;  %2362 = vmatmul.mubr.f32.vlgmr.msra.gmra.mrb[14].mxu0 %v7382_v51  ;;  %v5638_v48 = vpack.c.bf16 %v8644_v22, %v8643_v61  ;;  %v8647_v30 = vand.u32 4294901760, %v7121_v49  ;;  %v7564_v49 = vld [vmem:[%s8297_s1 + $0x3c0] sm:$0xff]  ;;  %v7573_v61 = vsub.f32 %v7521_v57, %v8433_v20  ;;  %v119_v22 = vld [vmem:[%s8297_s1 + $0x338] sm:$0xff] }
 0x116   :  { %5635 = vmatpush3.bf16.msra.mxu0 %v5634_v2  ;;  %2636 = vmatprep.mubr.f32.mxu0 %v8645_v56  ;;  %v7547_v2 = vsub.f32 %v7501_v40, %v8435_v58  ;;  %v8655_v20 = vand.u32 4294901760, %v7225_v26  ;;  %v2754_v58 = vand.u32 4294901760, %v119_v22  ;;  %v8661_v26 = vand.u32 4294901760, %v7297_v16 }
 0x117   :  { %5627 = vmatpush3.bf16.msra.mxu1 %v7409_v0  ;;  %5637 = vmatprep.subr.bf16.mxu0 %v5636_v19  ;;  %v5640_v6 = vpack.c.bf16 %v8647_v30, %v8646_v63  ;;  %v5642_v19 = vpack.c.bf16 %v8649_v27, %v8648_v34  ;;  %v8650_v63 = vand.u32 4294901760, %v7149_v14  ;;  %v2802_v30 = vand.u32 4294901760, %v7559_v32  ;;  %v120_v14 = vld [vmem:[%s8297_s1 + $0x340] sm:$0xff] }
 0x118   :  { %5629 = vmatprep.subr.bf16.mxu1 %v7411_v18  ;;  %v2805_v27 = vand.u32 4294901760, %v7564_v49  ;;  %v5648_v35 = vpack.c.bf16 %v8655_v20, %v8654_v11  ;;  %v8657_v34 = vand.u32 4294901760, %v7265_v25  ;;  %v7618_v20 = vpack.c.bf16 %v8661_v26, %v8660_v52 }
 0x119   :  { %v8445_v51 = vand.u32 4294901760, %v7573_v61  ;;  %v2757_v25 = vand.u32 4294901760, %v120_v14  ;;  %v8662_v16 = vand.u32 4294901760, %v7547_v2  ;;  %v8663_v11 = vand.u32 4294901760, %v7326_v41 }
 0x11a   :  { %5639 = vmatpush3.bf16.msra.mxu0 %v5638_v48  ;;  %v8651_v48 = vand.u32 4294901760, %v7158_v33  ;;  %v8668_v41 = vand.u32 4294901760, %v7374_v29  ;;  %v7670_v26 = vsub.f32 %v119_v22, %v2754_v58  ;;  %v2811_v29 = vand.u32 4294901760, %v138_v21 }
 0x11b   :  { %5631 = vmatpush3.bf16.msra.mxu1 %v7434_v9  ;;  %5641 = vmatprep.subr.bf16.mxu0 %v5640_v6  ;;  %v8652_v6 = vand.u32 4294901760, %v7181_v8  ;;  %v8658_v8 = vand.u32 4294901760, %v8630_v59  ;;  %v2975_v59 = vsub.f32 %v7547_v2, %v8662_v16  ;;  %v7684_v22 = vsub.f32 %v120_v14, %v2757_v25 }
 0x11c   :  { %v5644_v24 = vpack.c.bf16 %v8651_v48, %v8650_v63  ;;  %5665 = vmatprep.subr.bf16.mxu1 %v7067_v53  ;;  %v8653_v63 = vand.u32 4294901760, %v7188_v5  ;;  %v8656_v53 = vand.u32 4294901760, %v7237_v10  ;;  %v8659_v5 = vand.u32 4294901760, %v8631_v42 }
 0x11d   :  { %v7623_v10 = vsub.f32 %v7559_v32, %v2802_v30  ;;  %v8440_v42 = vand.u32 4294901760, %v7586_v38  ;;  %v8664_v32 = vand.u32 4294901760, %v7328_v62  ;;  %v8669_v62 = vand.u32 4294901760, %v7377_v15 }
 0x11e   :  { %v5646_v48 = vpack.c.bf16 %v8653_v63, %v8652_v6  ;;  %2470 = vmatmul.mubr.f32.vlgmr.msra.gmra.mrb[14].mxu1 %v1989_v12  ;;  %5643 = vmatpush3.bf16.msra.mxu0 %v5642_v19  ;;  %v5650_v33 = vpack.c.bf16 %v8657_v34, %v8656_v53  ;;  %v5652_v6 = vpack.c.bf16 %v8659_v5, %v8658_v8  ;;  %v137_v12 = vld [vmem:[%s8297_s1 + $0x3c8] sm:$0xff]  ;;  %v8665_v34 = vand.u32 4294901760, %v7554_v3 }
 0x11f   :  { %5667 = vmatpush3.bf16.msra.mxu1 %v8626_v17  ;;  %5645 = vmatprep.subr.bf16.mxu0 %v5644_v24  ;;  %v156_v17 = vld [vmem:[%s8298_s0 + $0x38] sm:$0xff]  ;;  %v7643_v19 = vpack.c.bf16 %v8664_v32, %v8663_v11  ;;  %v7646_v24 = vsub.f32 %v7564_v49, %v2805_v27  ;;  %v8666_v53 = vand.u32 4294901760, %v7365_v23  ;;  %v8667_v8 = vand.u32 4294901760, %v7368_v1  ;;  %v121_v1 = vld [vmem:[%s8297_s1 + $0x348] sm:$0xff]  ;;  %v122_v23 = vld [vmem:[%s8297_s1 + $0x350] sm:$0xff] }
 0x120   :  { %5669 = vmatprep.subr.bf16.mxu1 %v8627_v31  ;;  %2740 = vmatprep.mubr.f32.mxu1 %v8645_v56  ;;  %v2982_v63 = vsub.f32 %v7554_v3, %v8665_v34  ;;  %v7662_v5 = vpack.c.bf16 %v8669_v62, %v8668_v41  ;;  %v8670_v49 = vand.u32 4294901760, %v7394_v7  ;;  %v8671_v56 = vand.u32 4294901760, %v7397_v47 }
 0x121   :  { %v7656_v31 = vpack.c.bf16 %v8667_v8, %v8666_v53  ;;  %v2808_v15 = vand.u32 4294901760, %v137_v12  ;;  %v2863_v7 = vsub.f32 %v7573_v61, %v8445_v51  ;;  %v7681_v47 = vand.u32 4294901760, %v156_v17 }
 0x122   :  { %v7668_v52 = vpack.c.bf16 %v8671_v56, %v8670_v49  ;;  %5647 = vmatpush3.bf16.msra.mxu0 %v5646_v48  ;;  %v2976_v16 = vand.u32 4294901760, %v2975_v59  ;;  %v2870_v11 = vsub.f32 %v7586_v38, %v8440_v42  ;;  %v8436_v48 = vand.u32 4294901760, %v7623_v10 }
 0x123   :  { %8672 = vst [vmem:[#allocation7_spill] sm:$0xff] %v7681_v47  ;;  %5671 = vmatpush3.bf16.msra.mxu1 %v8629_v37  ;;  %5649 = vmatprep.subr.bf16.mxu0 %v5648_v35  ;;  %v2983_v32 = vand.u32 4294901760, %v2982_v63  ;;  %v2760_v34 = vand.u32 4294901760, %v121_v1  ;;  %v2763_v53 = vand.u32 4294901760, %v122_v23  ;;  %v8439_v8 = vand.u32 4294901760, %v7646_v24 }
 0x124   :  { %5673 = vmatprep.subr.bf16.mxu1 %v8632_v46  ;;  %v8673_v41 = vand.u32 4294901760, %v7501_v40  ;;  %v8674_v37 = vand.u32 4294901760, %v7506_v4  ;;  %v8676_v14 = vand.u32 4294901760, %v7521_v57  ;;  %v8677_v59 = vand.u32 4294901760, %v7528_v13  ;;  %v139_v4 = vld [vmem:[%s8297_s1 + $0x3d8] sm:$0xff]  ;;  %v140_v57 = vld [vmem:[%s8297_s1 + $0x3e0] sm:$0xff] }
 0x125   :  { %v7704_v49 = vpack.c.bf16 %v2805_v27, %v2802_v30  ;;  %v7706_v46 = vpack.c.bf16 %v2757_v25, %v2754_v58  ;;  %v7708_v63 = vpack.c.bf16 %v2811_v29, %v2808_v15  ;;  %v7710_v56 = vsub.f32 %v137_v12, %v2808_v15  ;;  %v123_v27 = vld [vmem:[%s8297_s1 + $0x358] sm:$0xff] }
 0x126   :  { %v7696_v35 = vpack.c.bf16 %v8674_v37, %v8673_v41  ;;  %v7702_v62 = vpack.c.bf16 %v8677_v59, %v8676_v14  ;;  %5651 = vmatpush3.bf16.msra.mxu0 %v5650_v33  ;;  %v2864_v40 = vand.u32 4294901760, %v2863_v7  ;;  %v7719_v13 = vsub.f32 %v156_v17, %v7681_v47  ;;  %v124_v33 = vld [vmem:[%s8297_s1 + $0x360] sm:$0xff] }
 0x127   :  { %8679 = vst [vmem:[#allocation12_spill] sm:$0xff] %v7704_v49  ;;  %8680 = vst [vmem:[#allocation9_spill] sm:$0xff] %v7708_v63  ;;  %5675 = vmatpush3.bf16.msra.mxu1 %v8633_v45  ;;  %5653 = vmatprep.subr.bf16.mxu0 %v5652_v6  ;;  %v2871_v58 = vand.u32 4294901760, %v2870_v11  ;;  %v2989_v30 = vsub.f32 %v7623_v10, %v8436_v48  ;;  %v8437_v25 = vand.u32 4294901760, %v7670_v26  ;;  %v8438_v12 = vand.u32 4294901760, %v7684_v22 }
 0x128   :  { %8675 = vst [vmem:[#allocation2_spill] sm:$0xff] %v7696_v35  ;;  %8678 = vst [vmem:[#allocation3_spill] sm:$0xff] %v7702_v62  ;;  %v4286_v17 = vpop.f32.mrb[2].mxu0  ;;  %5677 = vmatprep.subr.bf16.mxu1 %v8634_v50  ;;  %v7734_v45 = vsub.f32 %v138_v21, %v2811_v29  ;;  %v7736_v6 = vpack.c.bf16 %v2983_v32, %v2976_v16  ;;  %v7738_v15 = vpack.c.bf16 %v2763_v53, %v2760_v34  ;;  %v141_v29 = vld [vmem:[%s8297_s1 + $0x3e8] sm:$0xff]  ;;  %v142_v16 = vld [vmem:[%s8297_s1 + $0x3f0] sm:$0xff] }
 0x129   :  { %v2996_v7 = vsub.f32 %v7646_v24, %v8439_v8  ;;  %v4287_v11 = vpop.f32.mrb[3].mxu0  ;;  %v7743_v41 = vsub.f32 %v121_v1, %v2760_v34  ;;  %v7745_v37 = vsub.f32 %v122_v23, %v2763_v53  ;;  %v2814_v14 = vand.u32 4294901760, %v139_v4 }
 0x12a   :  { %8681 = vst [vmem:[#allocation11_spill] sm:$0xff] %v7738_v15  ;;  %v2817_v59 = vand.u32 4294901760, %v140_v57  ;;  %v4288_v48 = vadd.f32 %v4287_v11, %v4286_v17  ;;  %5655 = vmatpush3.bf16.msra.mxu0 %v7618_v20  ;;  %v2766_v50 = vand.u32 4294901760, %v123_v27  ;;  %v2769_v21 = vand.u32 4294901760, %v124_v33 }
 0x12b   :  { %v8446_v1 = vand.u32 4294901760, %v7719_v13  ;;  %5679 = vmatpush3.bf16.msra.mxu1 %v8635_v28  ;;  %5657 = vmatprep.subr.bf16.mxu0 %v7643_v19  ;;  %v7757_v23 = vpack.c.bf16 %v2871_v58, %v2864_v40  ;;  %v2990_v32 = vand.u32 4294901760, %v2989_v30  ;;  %v2877_v20 = vsub.f32 %v7670_v26, %v8437_v25 }
 0x12c   :  { %v2884_v34 = vsub.f32 %v7684_v22, %v8438_v12  ;;  %v640_v53 = vadd.f32 %v4288_v48, %v7530_v39  ;;  %5681 = vmatprep.subr.bf16.mxu1 %v8636_v43  ;;  %v2997_v17 = vand.u32 4294901760, %v2996_v7  ;;  %v8444_v28 = vand.u32 4294901760, %v7710_v56  ;;  %v7780_v43 = vld [vmem:[%s8297_s1 + $0x368] sm:$0xff] }
 0x12d   :  { %v8443_v19 = vand.u32 4294901760, %v7734_v45  ;;  %v7769_v40 = vpack.c.bf16 %v2817_v59, %v2814_v14  ;;  %v2820_v58 = vand.u32 4294901760, %v141_v29  ;;  %v2823_v30 = vand.u32 4294901760, %v142_v16 }
 0x12e   :  { %v8441_v11 = vand.u32 4294901760, %v7743_v41  ;;  %5659 = vmatpush3.bf16.msra.mxu0 %v7656_v31  ;;  %v7773_v25 = vsub.f32 %v139_v4, %v2814_v14  ;;  %v7775_v12 = vsub.f32 %v140_v57, %v2817_v59  ;;  %v8442_v39 = vand.u32 4294901760, %v7745_v37 }
 0x12f   :  { %8682 = vst [vmem:[#allocation13_spill] sm:$0xff] %v7769_v40  ;;  %v2846_v48 = vsub.f32 %v7719_v13, %v8446_v1  ;;  %5683 = vmatpush3.bf16.msra.mxu1 %v7247_v54  ;;  %5661 = vmatprep.subr.bf16.mxu0 %v7662_v5  ;;  %v7788_v31 = vpack.c.bf16 %v2769_v21, %v2766_v50  ;;  %v2878_v7 = vand.u32 4294901760, %v2877_v20  ;;  %v2885_v59 = vand.u32 4294901760, %v2884_v34  ;;  %v144_v20 = vld [vmem:[%s8297_s1 + $0x400] sm:$0xff] }
 0x130   :  { %v7790_v4 = vsub.f32 %v123_v27, %v2766_v50  ;;  %v7792_v57 = vsub.f32 %v124_v33, %v2769_v21  ;;  %5685 = vmatprep.subr.bf16.mxu1 %v7267_v55  ;;  %v7795_v14 = vpack.c.bf16 %v2997_v17, %v2990_v32  ;;  %v3003_v8 = vsub.f32 %v7710_v56, %v8444_v28  ;;  %v126_v55 = vld [vmem:[%s8297_s1 + $0x370] sm:$0xff] }
 0x131   :  { %8683 = vst [vmem:[#allocation4_spill] sm:$0xff] %v7788_v31  ;;  %v3010_v54 = vsub.f32 %v7734_v45, %v8443_v19  ;;  %v4321_v5 = vpop.f32.mrb[2].mxu1  ;;  %v7803_v42 = vpack.c.bf16 %v2823_v30, %v2820_v58  ;;  %v7805_v27 = vsub.f32 %v141_v29, %v2820_v58  ;;  %v2772_v33 = vand.u32 4294901760, %v7780_v43  ;;  %v143_v29 = vld [vmem:[%s8297_s1 + $0x3f8] sm:$0xff] }
 0x132   :  { %8684 = vst [vmem:[#allocation5_spill] sm:$0xff] %v7790_v4  ;;  %8685 = vst [vmem:[#allocation6_spill] sm:$0xff] %v7792_v57  ;;  %v2891_v50 = vsub.f32 %v7743_v41, %v8441_v11  ;;  %v4322_v21 = vpop.f32.mrb[3].mxu1  ;;  %5663 = vmatpush3.bf16.msra.mxu0 %v7668_v52  ;;  %v2898_v32 = vsub.f32 %v7745_v37, %v8442_v39  ;;  %v8447_v17 = vand.u32 4294901760, %v7775_v12  ;;  %v2847_v58 = vand.u32 4294901760, %v2846_v48  ;;  %v127_v48 = vld [vmem:[%s8297_s1 + $0x378] sm:$0xff] }
 0x133   :  { %8686 = vst [vmem:[#allocation8_spill] sm:$0xff] %v7803_v42  ;;  %v4323_v11 = vadd.f32 %v4322_v21, %v4321_v5  ;;  %5687 = vmatpush3.bf16.msra.mxu1 %v7287_v36  ;;  %5697 = vmatprep.subr.bf16.mxu0 %v7696_v35  ;;  %v7828_v52 = vsub.f32 %v142_v16, %v2823_v30  ;;  %v8452_v39 = vand.u32 4294901760, %v7790_v4  ;;  %v8455_v19 = vand.u32 4294901760, %v7792_v57  ;;  %v128_v36 = vld [vmem:[%s8297_s1 + $0x380] sm:$0xff] }
 0x134   :  { %5689 = vmatprep.subr.bf16.mxu1 %v7324_v60  ;;  %v7833_v28 = vpack.c.bf16 %v2885_v59, %v2878_v7  ;;  %v3004_v51 = vand.u32 4294901760, %v3003_v8  ;;  %v3011_v1 = vand.u32 4294901760, %v3010_v54  ;;  %v2775_v34 = vand.u32 4294901760, %v126_v55 }
 0x135   :  { %v7841_v16 = vadd.f32 %v4323_v11, %v640_v53  ;;  %2638 = vmatmul.mubr.f32.vlgmr.msra.gmra.mrb[16].mxu0 %v7351_v44  ;;  %v7845_v30 = vsub.f32 %v7780_v43, %v2772_v33  ;;  %v2826_v60 = vand.u32 4294901760, %v143_v29  ;;  %v2829_v7 = vand.u32 4294901760, %v144_v20  ;;  %v145_v11 = vld [vmem:[%s8297_s1 + $0x408] sm:$0xff] }
 0x136   :  { %5699 = vmatpush3.bf16.msra.mxu0 %v7702_v62  ;;  %v2892_v8 = vand.u32 4294901760, %v2891_v50  ;;  %v2899_v59 = vand.u32 4294901760, %v2898_v32  ;;  %v8687_v54 = vand.u32 4294901760, %v7773_v25  ;;  %v3024_v53 = vsub.f32 %v7775_v12, %v8447_v17  ;;  %2848 = vmatprep.mubr.f32.mxu0 %v2847_v58 }
 0x137   :  { %5691 = vmatpush3.bf16.msra.mxu1 %v7409_v0  ;;  %5701 = vmatprep.subr.bf16.mxu0 %v7704_v49  ;;  %v2778_v43 = vand.u32 4294901760, %v127_v48  ;;  %v2781_v50 = vand.u32 4294901760, %v128_v36  ;;  %v2905_v21 = vsub.f32 %v7790_v4, %v8452_v39  ;;  %v2912_v32 = vsub.f32 %v7792_v57, %v8455_v19 }
 0x138   :  { %v3017_v5 = vsub.f32 %v7773_v25, %v8687_v54  ;;  %v146_v54 = vld [vmem:[%s8297_s1 + $0x410] sm:$0xff]  ;;  %5693 = vmatprep.subr.bf16.mxu1 %v7411_v18  ;;  %v7869_v58 = vpack.c.bf16 %v3011_v1, %v3004_v51  ;;  %v7871_v0 = vpack.c.bf16 %v2775_v34, %v2772_v33  ;;  %v7873_v17 = vsub.f32 %v126_v55, %v2775_v34 }
 0x139   :  { %v8460_v49 = vand.u32 4294901760, %v7805_v27  ;;  %v7876_v62 = vpack.c.bf16 %v2829_v7, %v2826_v60  ;;  %v7878_v39 = vsub.f32 %v143_v29, %v2826_v60  ;;  %v7880_v4 = vsub.f32 %v144_v20, %v2829_v7  ;;  %v130_v7 = vld [vmem:[%s8297_s1 + $0x390] sm:$0xff] }
 0x13a   :  { %8688 = vst [vmem:[#allocation10_spill] sm:$0xff] %v7871_v0  ;;  %v2832_v19 = vand.u32 4294901760, %v145_v11  ;;  %5703 = vmatpush3.bf16.msra.mxu0 %v7706_v46  ;;  %v3018_v57 = vand.u32 4294901760, %v3017_v5  ;;  %v3025_v35 = vand.u32 4294901760, %v3024_v53  ;;  %v2835_v18 = vand.u32 4294901760, %v146_v54 }
 0x13b   :  { %8689 = vst [vmem:[#allocation14_spill] sm:$0xff] %v7876_v62  ;;  %v8461_v51 = vand.u32 4294901760, %v7828_v52  ;;  %5695 = vmatpush3.bf16.msra.mxu1 %v7434_v9  ;;  %5705 = vmatprep.subr.bf16.mxu0 %v7708_v63  ;;  %v7886_v1 = vpack.c.bf16 %v2899_v59, %v2892_v8  ;;  %v7888_v55 = vpack.c.bf16 %v2781_v50, %v2778_v43  ;;  %v2906_v33 = vand.u32 4294901760, %v2905_v21  ;;  %v129_v9 = vld [vmem:[%s8297_s1 + $0x388] sm:$0xff]  ;;  %v7918_v59 = vld [vmem:[%s8297_s1 + $0x420] sm:$0xff]  ;;  %v155_v21 = vld [vmem:[%s8298_s0 + $0x30] sm:$0xff] }
 0x13c   :  { %v2913_v29 = vand.u32 4294901760, %v2912_v32  ;;  %5729 = vmatprep.subr.bf16.mxu1 %v7736_v6  ;;  %v7891_v20 = vsub.f32 %v127_v48, %v2778_v43  ;;  %v7893_v34 = vsub.f32 %v128_v36, %v2781_v50  ;;  %v7898_v60 = vsub.f32 %v7805_v27, %v8460_v49  ;;  %v7913_v36 = vld [vmem:[%s8297_s1 + $0x418] sm:$0xff] }
 0x13d   :  { %v8462_v8 = vand.u32 4294901760, %v7845_v30  ;;  %v7907_v6 = vsub.f32 %v145_v11, %v2832_v19  ;;  %v8470_v48 = vand.u32 4294901760, %v7873_v17  ;;  %v8469_v5 = vand.u32 4294901760, %v7878_v39 }
 0x13e   :  { %8690 = vst [vmem:[#allocation15_spill] sm:$0xff] %v7893_v34  ;;  %2742 = vmatmul.mubr.f32.vlgmr.msra.gmra.mrb[16].mxu1 %v7351_v44  ;;  %5707 = vmatpush3.bf16.msra.mxu0 %v7738_v15  ;;  %v5740_v11 = vpack.c.bf16 %v3025_v35, %v3018_v57  ;;  %v7924_v43 = vpack.c.bf16 %v2835_v18, %v2832_v19  ;;  %v2784_v44 = vand.u32 4294901760, %v129_v9  ;;  %v2787_v53 = vand.u32 4294901760, %v130_v7 }
 0x13f   :  { %8691 = vst [vmem:[#allocation16_spill] sm:$0xff] %v7907_v6  ;;  %v3038_v50 = vsub.f32 %v7828_v52, %v8461_v51  ;;  %5731 = vmatpush3.bf16.msra.mxu1 %v7757_v23  ;;  %5709 = vmatprep.subr.bf16.mxu0 %v7769_v40  ;;  %v5742_v32 = vpack.c.bf16 %v2913_v29, %v2906_v33  ;;  %v3032_v35 = vand.u32 4294901760, %v7898_v60  ;;  %v2838_v57 = vand.u32 4294901760, %v7913_v36  ;;  %v7946_v23 = vld [vmem:[%s8297_s1 + $0x398] sm:$0xff] }
 0x140   :  { %v7934_v49 = vsub.f32 %v146_v54, %v2835_v18  ;;  %5733 = vmatprep.subr.bf16.mxu1 %v7795_v14  ;;  %v2919_v19 = vsub.f32 %v7845_v30, %v8462_v8  ;;  %v2841_v51 = vand.u32 4294901760, %v7918_v59  ;;  %v7951_v54 = vld [vmem:[%s8297_s1 + $0x3a0] sm:$0xff]  ;;  %3084 = vmatprep.mubr.f32.mxu1 %v7681_v47  ;;  %v2926_v14 = vsub.f32 %v7873_v17, %v8470_v48 }
 0x141   :  { %v3045_v18 = vsub.f32 %v7878_v39, %v8469_v5  ;;  %v8692_v33 = vand.u32 4294901760, %v7880_v4  ;;  %v7963_v60 = vand.u32 4294901760, %v155_v21  ;;  %v3039_v8 = vand.u32 4294901760, %v3038_v50 }
 0x142   :  { %5711 = vmatpush3.bf16.msra.mxu0 %v7788_v31  ;;  %v7971_v5 = vsub.f32 %v129_v9, %v2784_v44  ;;  %v7973_v48 = vsub.f32 %v130_v7, %v2787_v53  ;;  %v2793_v63 = vand.u32 4294901760, %v7951_v54  ;;  %v2920_v50 = vand.u32 4294901760, %v2919_v19 }
 0x143   :  { %v3052_v29 = vsub.f32 %v7880_v4, %v8692_v33  ;;  %5735 = vmatpush3.bf16.msra.mxu1 %v7833_v28  ;;  %5713 = vmatprep.subr.bf16.mxu0 %v7803_v42  ;;  %v2790_v33 = vand.u32 4294901760, %v7946_v23  ;;  %v7979_v40 = vsub.f32 %v7913_v36, %v2838_v57  ;;  %v7982_v15 = vsub.f32 %v7918_v59, %v2841_v51 }
 0x144   :  { %5737 = vmatprep.subr.bf16.mxu1 %v7869_v58  ;;  %v2927_v47 = vand.u32 4294901760, %v2926_v14  ;;  %v3046_v9 = vand.u32 4294901760, %v3045_v18  ;;  %v7986_v7 = vsub.f32 %v155_v21, %v7963_v60  ;;  %v7989_v31 = vpack.c.bf16 %v2787_v53, %v2784_v44 }
 0x145   :  { %v3053_v42 = vand.u32 4294901760, %v3052_v29  ;;  %v8693_v58 = vand.u32 4294901760, %v7891_v20  ;;  %v8694_v19 = vand.u32 4294901760, %v7893_v34  ;;  %v8695_v28 = vand.u32 4294901760, %v7907_v6 }
 0x146   :  { %5715 = vmatpush3.bf16.msra.mxu0 %v7871_v0  ;;  %v8003_v21 = vsub.f32 %v7946_v23, %v2790_v33  ;;  %v8006_v53 = vsub.f32 %v7951_v54, %v2793_v63  ;;  %v2953_v18 = vand.u32 4294901760, %v7973_v48  ;;  %v5746_v0 = vpack.c.bf16 %v2927_v47, %v2920_v50 }
 0x147   :  { %v2933_v36 = vsub.f32 %v7891_v20, %v8693_v58  ;;  %v2940_v59 = vsub.f32 %v7893_v34, %v8694_v19  ;;  %v3059_v14 = vsub.f32 %v7907_v6, %v8695_v28  ;;  %5739 = vmatpush3.bf16.msra.mxu1 %v7886_v1  ;;  %5717 = vmatprep.subr.bf16.mxu0 %v7876_v62  ;;  %v8696_v19 = vand.u32 4294901760, %v7934_v49 }
 0x148   :  { %v4356_v29 = vpop.f32.mrb[4].mxu0  ;;  %5741 = vmatprep.subr.bf16.mxu1 %v5740_v11  ;;  %v5744_v58 = vpack.c.bf16 %v3039_v8, %v3032_v35  ;;  %v8487_v1 = vand.u32 4294901760, %v7979_v40  ;;  %v8015_v6 = vpack.c.bf16 %v2841_v51, %v2838_v57  ;;  %v5748_v54 = vpack.c.bf16 %v3053_v42, %v3046_v9 }
 0x149   :  { %v3066_v28 = vsub.f32 %v7934_v49, %v8696_v19  ;;  %v4357_v23 = vpop.f32.mrb[5].mxu0  ;;  %v2851_v44 = vand.u32 4294901760, %v7986_v7  ;;  %v2934_v11 = vand.u32 4294901760, %v2933_v36  ;;  %v2941_v8 = vand.u32 4294901760, %v2940_v59 }
 0x14a   :  { %v4358_v34 = vadd.f32 %v4357_v23, %v4356_v29  ;;  %5719 = vmatpush3.bf16.msra.mxu0 %v7888_v55  ;;  %v3060_v35 = vand.u32 4294901760, %v3059_v14  ;;  %v8697_v19 = vand.u32 4294901760, %v7971_v5  ;;  %v2954_v47 = vsub.f32 %v7973_v48, %v2953_v18 }
 0x14b   :  { %5743 = vmatpush3.bf16.msra.mxu1 %v5742_v32  ;;  %5721 = vmatprep.subr.bf16.mxu0 %v7924_v43  ;;  %v8485_v42 = vand.u32 4294901760, %v8003_v21  ;;  %v8486_v51 = vand.u32 4294901760, %v8006_v53  ;;  %v3067_v50 = vand.u32 4294901760, %v3066_v28  ;;  %v3073_v32 = vsub.f32 %v7979_v40, %v8487_v1 }
 0x14c   :  { %v2947_v62 = vsub.f32 %v7971_v5, %v8697_v19  ;;  %v916_v57 = vadd.f32 %v4358_v34, %v7841_v16  ;;  %5745 = vmatprep.subr.bf16.mxu1 %v5744_v58  ;;  %v8698_v9 = vand.u32 4294901760, %v7982_v15  ;;  %v2852_v59 = vsub.f32 %v7986_v7, %v2851_v44 }
 0x14d   :  { %v8039_v14 = vpack.c.bf16 %v2793_v63, %v2790_v33  ;;  %v5750_v29 = vpack.c.bf16 %v2941_v8, %v2934_v11  ;;  %v5760_v16 = vpack.c.bf16 %v7554_v3, %v7547_v2  ;;  %v2955_v58 = vand.u32 4294901760, %v2954_v47 }
 0x14e   :  { %v3080_v36 = vsub.f32 %v7982_v15, %v8698_v9  ;;  %5723 = vmatpush3.bf16.msra.mxu0 %v7989_v31  ;;  %v2948_v34 = vand.u32 4294901760, %v2947_v62  ;;  %v2961_v28 = vsub.f32 %v8003_v21, %v8485_v42  ;;  %v2968_v23 = vsub.f32 %v8006_v53, %v8486_v51 }
 0x14f   :  { %5747 = vmatpush3.bf16.msra.mxu1 %v5746_v0  ;;  %5725 = vmatprep.subr.bf16.mxu0 %v8015_v6  ;;  %v5752_v63 = vpack.c.bf16 %v3067_v50, %v3060_v35  ;;  %v3074_v33 = vand.u32 4294901760, %v3073_v32  ;;  %v2853_v19 = vand.u32 4294901760, %v2852_v59  ;;  %v5762_v62 = vpack.c.bf16 %v7586_v38, %v7573_v61 }
 0x150   :  { %5749 = vmatprep.subr.bf16.mxu1 %v5748_v54  ;;  %v3081_v11 = vand.u32 4294901760, %v3080_v36  ;;  %v5764_v0 = vpack.c.bf16 %v7646_v24, %v7623_v10  ;;  %v5754_v42 = vpack.c.bf16 %v2955_v58, %v2948_v34  ;;  %v2962_v51 = vand.u32 4294901760, %v2961_v28  ;;  %v8702_v58 = vld [vmem:[#allocation3_spill] sm:$0xff] }
 0x151   :  { %v4391_v8 = vpop.f32.mrb[4].mxu1  ;;  %v2969_v54 = vand.u32 4294901760, %v2968_v23  ;;  %v5766_v32 = vpack.c.bf16 %v7684_v22, %v7670_v26  ;;  %v5768_v59 = vpack.c.bf16 %v7734_v45, %v7710_v56  ;;  %v5776_v28 = vpack.c.bf16 %v7828_v52, %v7805_v27  ;;  %v8703_v23 = vld [vmem:[#allocation12_spill] sm:$0xff] }
 0x152   :  { %v4392_v9 = vpop.f32.mrb[5].mxu1  ;;  %5727 = vmatpush3.bf16.msra.mxu0 %v8039_v14  ;;  %v5756_v35 = vpack.c.bf16 %v3081_v11, %v3074_v33  ;;  %v5778_v33 = vpack.c.bf16 %v7873_v17, %v7845_v30  ;;  %v5780_v11 = vpack.c.bf16 %v7880_v4, %v7878_v39 }
 0x153   :  { %v4393_v47 = vadd.f32 %v4392_v9, %v4391_v8  ;;  %5751 = vmatpush3.bf16.msra.mxu1 %v5750_v29  ;;  %5761 = vmatprep.subr.bf16.mxu0 %v5760_v16  ;;  %v5758_v36 = vpack.c.bf16 %v2969_v54, %v2962_v51  ;;  %v5770_v29 = vpack.c.bf16 %v7745_v37, %v7743_v41  ;;  %v8699_v16 = vld [vmem:[#allocation2_spill] sm:$0xff]  ;;  %v8705_v8 = vld [vmem:[#allocation9_spill] sm:$0xff] }
 0x154   :  { %5753 = vmatprep.subr.bf16.mxu1 %v5752_v63  ;;  %v8701_v51 = vld [vmem:[#allocation6_spill] sm:$0xff]  ;;  %v8704_v63 = vand.u32 4294901760, %v7719_v13  ;;  %v8709_v54 = vld [vmem:[#allocation13_spill] sm:$0xff] }
 0x155   :  { %v1020_v50 = vadd.f32 %v4393_v47, %v916_v57  ;;  %2854 = vmatmul.mubr.f32.vlgmr.msra.gmra.mrb[18].mxu0 %v2853_v19  ;;  %v5772_v57 = vpack.c.bf16 %v7775_v12, %v7773_v25  ;;  %v8706_v19 = vld [vmem:[#allocation15_spill] sm:$0xff] }
 0x156   :  { %5763 = vmatpush3.bf16.msra.mxu0 %v5762_v62  ;;  %3221 = vmatprep.mubr.f32.mxu0 %v7719_v13  ;;  %v5782_v9 = vpack.c.bf16 %v8706_v19, %v7891_v20  ;;  %v8707_v62 = vld [vmem:[#allocation11_spill] sm:$0xff]  ;;  %v8708_v13 = vld [vmem:[#allocation16_spill] sm:$0xff] }
 0x157   :  { %5755 = vmatpush3.bf16.msra.mxu1 %v5754_v42  ;;  %5765 = vmatprep.subr.bf16.mxu0 %v5764_v0  ;;  %v8700_v42 = vld [vmem:[#allocation5_spill] sm:$0xff]  ;;  %v5784_v0 = vpack.c.bf16 %v7934_v49, %v8708_v13 }
 0x158   :  { %5757 = vmatprep.subr.bf16.mxu1 %v5756_v35  ;;  %v5774_v34 = vpack.c.bf16 %v8701_v51, %v8700_v42 }
 0x15a   :  { %5767 = vmatpush3.bf16.msra.mxu0 %v5766_v32 }
 0x15b   :  { %5759 = vmatpush3.bf16.msra.mxu1 %v5758_v36  ;;  %5769 = vmatprep.subr.bf16.mxu0 %v5768_v59  ;;  %v5786_v36 = vpack.c.bf16 %v7973_v48, %v7971_v5  ;;  %v8710_v59 = vld [vmem:[#allocation4_spill] sm:$0xff] }
 0x15c   :  { %5793 = vmatprep.subr.bf16.mxu1 %v8699_v16 }
 0x15e   :  { %3086 = vmatmul.mubr.f32.vlgmr.msra.gmra.mrb[18].mxu1 %v7963_v60  ;;  %5771 = vmatpush3.bf16.msra.mxu0 %v5770_v29  ;;  %v5788_v29 = vpack.c.bf16 %v7982_v15, %v7979_v40 }
 0x15f   :  { %5795 = vmatpush3.bf16.msra.mxu1 %v8702_v58  ;;  %5773 = vmatprep.subr.bf16.mxu0 %v5772_v57 }
 0x160   :  { %5797 = vmatprep.subr.bf16.mxu1 %v8703_v23  ;;  %3328 = vmatprep.mubr.f32.mxu1 %v8704_v63  ;;  %v8712_v63 = vld [vmem:[#allocation10_spill] sm:$0xff] }
 0x162   :  { %5775 = vmatpush3.bf16.msra.mxu0 %v5774_v34  ;;  %v8711_v34 = vld [vmem:[#allocation8_spill] sm:$0xff] }
 0x163   :  { %5799 = vmatpush3.bf16.msra.mxu1 %v7706_v46  ;;  %5777 = vmatprep.subr.bf16.mxu0 %v5776_v28  ;;  %v5790_v28 = vpack.c.bf16 %v8006_v53, %v8003_v21 }
 0x164   :  { %5801 = vmatprep.subr.bf16.mxu1 %v8705_v8 }
 0x166   :  { %5779 = vmatpush3.bf16.msra.mxu0 %v5778_v33  ;;  %v8713_v33 = vand.u32 4294901760, %v7547_v2  ;;  %v8719_v2 = vand.u32 4294901760, %v7646_v24  ;;  %v8724_v24 = vand.u32 4294901760, %v7734_v45  ;;  %v8730_v45 = vand.u32 4294901760, %v8701_v51 }
 0x167   :  { %5803 = vmatpush3.bf16.msra.mxu1 %v8707_v62  ;;  %5781 = vmatprep.subr.bf16.mxu0 %v5780_v11  ;;  %v8714_v11 = vand.u32 4294901760, %v7554_v3 }
 0x168   :  { %v4426_v47 = vpop.f32.mrb[6].mxu0  ;;  %5805 = vmatprep.subr.bf16.mxu1 %v8709_v54 }
 0x169   :  { %v4427_v35 = vpop.f32.mrb[7].mxu0 }
 0x16a   :  { %v4428_v32 = vadd.f32 %v4427_v35, %v4426_v47  ;;  %5783 = vmatpush3.bf16.msra.mxu0 %v5782_v9  ;;  %v5824_v9 = vpack.c.bf16 %v8714_v11, %v8713_v33  ;;  %v8715_v47 = vld [vmem:[#allocation14_spill] sm:$0xff]  ;;  %v8722_v11 = vld [vmem:[#allocation7_spill] sm:$0xff] }
 0x16b   :  { %5807 = vmatpush3.bf16.msra.mxu1 %v8710_v59  ;;  %5785 = vmatprep.subr.bf16.mxu0 %v5784_v0 }
 0x16c   :  { %v1132_v57 = vadd.f32 %v4428_v32, %v1020_v50  ;;  %5809 = vmatprep.subr.bf16.mxu1 %v8711_v34  ;;  %v8716_v50 = vand.u32 4294901760, %v7573_v61  ;;  %v8717_v32 = vand.u32 4294901760, %v7586_v38  ;;  %v8720_v61 = vand.u32 4294901760, %v7670_v26 }
 0x16d   :  { %v8721_v38 = vand.u32 4294901760, %v7684_v22  ;;  %v8726_v26 = vand.u32 4294901760, %v7745_v37  ;;  %v8727_v22 = vand.u32 4294901760, %v7773_v25  ;;  %v8731_v37 = vand.u32 4294901760, %v7805_v27 }
 0x16e   :  { %5787 = vmatpush3.bf16.msra.mxu0 %v5786_v36  ;;  %v5826_v36 = vpack.c.bf16 %v8717_v32, %v8716_v50  ;;  %v8732_v25 = vand.u32 4294901760, %v7828_v52  ;;  %v8736_v27 = vand.u32 4294901760, %v7880_v4  ;;  %v8737_v52 = vand.u32 4294901760, %v7891_v20 }
 0x16f   :  { %5811 = vmatpush3.bf16.msra.mxu1 %v8712_v63  ;;  %5789 = vmatprep.subr.bf16.mxu0 %v5788_v29  ;;  %v8718_v29 = vand.u32 4294901760, %v7623_v10  ;;  %v8723_v10 = vand.u32 4294901760, %v7710_v56  ;;  %v8729_v56 = vand.u32 4294901760, %v8700_v42  ;;  %v8735_v42 = vand.u32 4294901760, %v7878_v39 }
 0x170   :  { %5813 = vmatprep.subr.bf16.mxu1 %v8715_v47  ;;  %v8745_v32 = vand.u32 4294901760, %v8006_v53 }
 0x171   :  { %v4461_v0 = vpop.f32.mrb[6].mxu1  ;;  %v5828_v3 = vpack.c.bf16 %v8719_v2, %v8718_v29  ;;  %v5844_v51 = vpack.c.bf16 %v8736_v27, %v8735_v42  ;;  %v20_v42 = vld [vmem:[%s8297_s1 + $0x20] sm:$0xff] }
 0x172   :  { %v4462_v35 = vpop.f32.mrb[7].mxu1  ;;  %5791 = vmatpush3.bf16.msra.mxu0 %v5790_v28  ;;  %v5830_v28 = vpack.c.bf16 %v8721_v38, %v8720_v61 }
 0x173   :  { %v4463_v1 = vadd.f32 %v4462_v35, %v4461_v0  ;;  %5815 = vmatpush3.bf16.msra.mxu1 %v7888_v55  ;;  %5825 = vmatprep.subr.bf16.mxu0 %v5824_v9  ;;  %v5832_v9 = vpack.c.bf16 %v8724_v24, %v8723_v10  ;;  %v8728_v0 = vand.u32 4294901760, %v7775_v12  ;;  %v5840_v12 = vpack.c.bf16 %v8732_v25, %v8731_v37  ;;  %v18_v37 = vld [vmem:[%s8297_s1 + $0x10] sm:$0xff] }
 0x174   :  { %5817 = vmatprep.subr.bf16.mxu1 %v7924_v43 }
 0x175   :  { %v1364_v33 = vadd.f32 %v4463_v1, %v1132_v57  ;;  %3224 = vmatmul.mubr.f32.vlgmr.msra.gmra.mrb[20].mxu0 %v7986_v7  ;;  %v8725_v1 = vand.u32 4294901760, %v7743_v41  ;;  %v5836_v35 = vpack.c.bf16 %v8728_v0, %v8727_v22  ;;  %v5838_v41 = vpack.c.bf16 %v8730_v45, %v8729_v56 }
 0x176   :  { %5827 = vmatpush3.bf16.msra.mxu0 %v5826_v36  ;;  %3498 = vmatprep.mubr.f32.mxu0 %v8722_v11  ;;  %v8733_v7 = vand.u32 4294901760, %v7845_v30 }
 0x177   :  { %5819 = vmatpush3.bf16.msra.mxu1 %v7989_v31  ;;  %5829 = vmatprep.subr.bf16.mxu0 %v5828_v3  ;;  %v5834_v57 = vpack.c.bf16 %v8726_v26, %v8725_v1 }
 0x178   :  { %5821 = vmatprep.subr.bf16.mxu1 %v8015_v6 }
 0x17a   :  { %5831 = vmatpush3.bf16.msra.mxu0 %v5830_v28 }
 0x17b   :  { %5823 = vmatpush3.bf16.msra.mxu1 %v8039_v14  ;;  %5833 = vmatprep.subr.bf16.mxu0 %v5832_v9 }
 0x17c   :  { %5857 = vmatprep.subr.bf16.mxu1 %v8699_v16 }
 0x17e   :  { %3332 = vmatmul.mubr.f32.vlgmr.msra.gmra.mrb[20].mxu1 %v2851_v44  ;;  %5835 = vmatpush3.bf16.msra.mxu0 %v5834_v57  ;;  %v8734_v44 = vand.u32 4294901760, %v7873_v17  ;;  %v8739_v17 = vand.u32 4294901760, %v8708_v13 }
 0x17f   :  { %5859 = vmatpush3.bf16.msra.mxu1 %v8702_v58  ;;  %5837 = vmatprep.subr.bf16.mxu0 %v5836_v35  ;;  %v8738_v58 = vand.u32 4294901760, %v8706_v19  ;;  %v8742_v19 = vand.u32 4294901760, %v7979_v40 }
 0x180   :  { %5861 = vmatprep.subr.bf16.mxu1 %v8703_v23  ;;  %3602 = vmatprep.mubr.f32.mxu1 %v8722_v11  ;;  %v5842_v16 = vpack.c.bf16 %v8734_v44, %v8733_v7 }
 0x181   :  { %v5846_v23 = vpack.c.bf16 %v8738_v58, %v8737_v52  ;;  %v3656_v58 = vand.u32 4294901760, %v20_v42 }
 0x182   :  { %5839 = vmatpush3.bf16.msra.mxu0 %v5838_v41  ;;  %v17_v41 = vld [vmem:[%s8297_s1 + $0x8] sm:$0xff] }
 0x183   :  { %5863 = vmatpush3.bf16.msra.mxu1 %v7706_v46  ;;  %5841 = vmatprep.subr.bf16.mxu0 %v5840_v12  ;;  %v8740_v46 = vand.u32 4294901760, %v7934_v49  ;;  %v3647_v25 = vand.u32 4294901760, %v17_v41  ;;  %v3650_v12 = vand.u32 4294901760, %v18_v37 }
 0x184   :  { %5865 = vmatprep.subr.bf16.mxu1 %v8705_v8  ;;  %v8741_v8 = vand.u32 4294901760, %v7971_v5 }
 0x185   :  { %v5848_v30 = vpack.c.bf16 %v8740_v46, %v8739_v17  ;;  %v8194_v7 = vsub.f32 %v17_v41, %v3647_v25  ;;  %v8196_v44 = vsub.f32 %v18_v37, %v3650_v12 }
 0x186   :  { %5843 = vmatpush3.bf16.msra.mxu0 %v5842_v16  ;;  %v5850_v20 = vpack.c.bf16 %v2953_v18, %v8741_v8  ;;  %v19_v16 = vld [vmem:[%s8297_s1 + $0x18] sm:$0xff] }
 0x187   :  { %5867 = vmatpush3.bf16.msra.mxu1 %v8707_v62  ;;  %5845 = vmatprep.subr.bf16.mxu0 %v5844_v51  ;;  %v8743_v62 = vand.u32 4294901760, %v7982_v15  ;;  %v3728_v27 = vand.u32 4294901760, %v8194_v7  ;;  %v3735_v51 = vand.u32 4294901760, %v8196_v44  ;;  %v3653_v52 = vand.u32 4294901760, %v19_v16 }
 0x188   :  { %v4496_v39 = vpop.f32.mrb[8].mxu0  ;;  %5869 = vmatprep.subr.bf16.mxu1 %v8709_v54  ;;  %v8744_v54 = vand.u32 4294901760, %v8003_v21 }
 0x189   :  { %v4497_v4 = vpop.f32.mrb[9].mxu0  ;;  %v5852_v49 = vpack.c.bf16 %v8743_v62, %v8742_v19  ;;  %v3736_v17 = vsub.f32 %v8196_v44, %v3735_v51  ;;  %v8208_v46 = vsub.f32 %v19_v16, %v3653_v52 }
 0x18a   :  { %v4498_v50 = vadd.f32 %v4497_v4, %v4496_v39  ;;  %5847 = vmatpush3.bf16.msra.mxu0 %v5846_v23  ;;  %v5854_v5 = vpack.c.bf16 %v8745_v32, %v8744_v54  ;;  %v3729_v23 = vsub.f32 %v8194_v7, %v3728_v27  ;;  %v5935_v32 = vmov 0.0|0.0  }
 0x18b   :  { %5871 = vmatpush3.bf16.msra.mxu1 %v8710_v59  ;;  %5849 = vmatprep.subr.bf16.mxu0 %v5848_v30  ;;  %v8210_v30 = vsub.f32 %v20_v42, %v3656_v58  ;;  %v3737_v4 = vand.u32 4294901760, %v3736_v17 }
 0x18c   :  { %v1502_v13 = vadd.f32 %v4498_v50, %v1364_v33  ;;  %5873 = vmatprep.subr.bf16.mxu1 %v8711_v34  ;;  %v3730_v39 = vand.u32 4294901760, %v3729_v23  ;;  %v3742_v50 = vand.u32 4294901760, %v8208_v46 }
 0x18d   :  { %v3749_v8 = vand.u32 4294901760, %v8210_v30 }
 0x18e   :  { %5851 = vmatpush3.bf16.msra.mxu0 %v5850_v20  ;;  %v5895_v62 = vpack.c.bf16 %v3737_v4, %v3730_v39  ;;  %v3632_v4 = vlaneseq }
 0x18f   :  { %5875 = vmatpush3.bf16.msra.mxu1 %v8712_v63  ;;  %5853 = vmatprep.subr.bf16.mxu0 %v5852_v49  ;;  %v3743_v49 = vsub.f32 %v8208_v46, %v3742_v50 }
 0x190   :  { %5877 = vmatprep.subr.bf16.mxu1 %v8715_v47 }
 0x191   :  { %v4531_v48 = vpop.f32.mrb[8].mxu1 }
 0x192   :  { %v4532_v18 = vpop.f32.mrb[9].mxu1  ;;  %5855 = vmatpush3.bf16.msra.mxu0 %v5854_v5  ;;  %v3744_v5 = vand.u32 4294901760, %v3743_v49 }
 0x193   :  { %v4533_v40 = vadd.f32 %v4532_v18, %v4531_v48  ;;  %5879 = vmatpush3.bf16.msra.mxu1 %v7888_v55  ;;  %5888 = vmatprep.subr.bf16.mxu0 %v5935_v32 }
 0x194   :  { %5881 = vmatprep.subr.bf16.mxu1 %v7924_v43 }
 0x195   :  { %v1610_v15 = vadd.f32 %v4533_v40, %v1502_v13  ;;  %3500 = vmatmul.mubr.f32.vlgmr.msra.gmra.mrb[22].mxu0 %v7963_v60  ;;  %v3750_v13 = vsub.f32 %v8210_v30, %v3749_v8 }
 0x197   :  { %5883 = vmatpush3.bf16.msra.mxu1 %v7989_v31  ;;  %v3751_v48 = vand.u32 4294901760, %v3750_v13  ;;  %v4180_v13 = vld [vmem:[%s8297_s1 + $0x1] ss:$0 sm:$0xff] }
 0x198   :  { %5885 = vmatprep.subr.bf16.mxu1 %v8015_v6 }
 0x199   :  { %v5898_v40 = vpack.c.bf16 %v3751_v48, %v3744_v5 }
 0x19b   :  { %5887 = vmatpush3.bf16.msra.mxu1 %v8039_v14 }
 0x19c   :  { %5894 = vmatprep.subr.bf16.mxu1 %v5935_v32 }
 0x19e   :  { %3604 = vmatmul.mubr.f32.vlgmr.msra.gmra.mrb[22].mxu1 %v7963_v60 }
 0x19f   :  { %5896 = vmatpush3.bf16.msra.mxu1 %v5895_v62 }
 0x1a0   :  { %5897 = vmatprep.subr.bf16.mxu1 %v5935_v32 }
 0x1a3   :  { %5899 = vmatpush3.bf16.msra.mxu1 %v5898_v40 }
 0x1a4   :  { %5906 = vmatprep.subr.bf16.mxu1 %v5935_v32 }
 0x1a8   :  { %v4566_v21 = vpop.f32.mrb[10].mxu0 }
 0x1a9   :  { %v4567_v53 = vpop.f32.mrb[11].mxu0 }
 0x1aa   :  { %v4568_v59 = vadd.f32 %v4567_v53, %v4566_v21  ;;  %v5937_v21 = vmov 0.0  }
 0x1ab   :  { %5073 = vmatprep.mubr.msk.f32.mxu1 %vm5936_vm0, %v5937_v21  ;;  %5062 = vmatprep.mubr.msk.f32.mxu0 %vm5936_vm0, %v5937_v21 }
 0x1ac   :  { %v1778_v34 = vadd.f32 %v4568_v59, %v1610_v15  ;;  %v8219_v15 = vpack.c.bf16 %v3650_v12, %v3647_v25 }
 0x1ae   :  { %5890 = vmatpush3.bf16.msra.mxu0 %v8219_v15 }
 0x1af   :  { %5891 = vmatprep.subr.bf16.mxu0 %v5935_v32 }
 0x1b1   :  { %v4601_v63 = vpop.f32.mrb[10].mxu1 }
 0x1b2   :  { %v4602_v47 = vpop.f32.mrb[11].mxu1 }
 0x1b3   :  { %v4603_v55 = vadd.f32 %v4602_v47, %v4601_v63  ;;  %v8228_v47 = vpack.c.bf16 %v3656_v58, %v3653_v52 }
 0x1b5   :  { %v1882_v36 = vadd.f32 %v4603_v55, %v1778_v34  ;;  %5893 = vmatpush3.bf16.msra.mxu0 %v8228_v47  ;;  %v5901_v55 = vpack.c.bf16 %v8196_v44, %v8194_v7 }
 0x1b6   :  { %5900 = vmatprep.subr.bf16.mxu0 %v5935_v32 }
 0x1c8   :  { %v4636_v43 = vpop.f32.mrb[12].mxu0 }
 0x1c9   :  { %v4637_v29 = vpop.f32.mrb[13].mxu0 }
 0x1ca   :  { %v4638_v2 = vadd.f32 %v4637_v29, %v4636_v43  ;;  %v8236_v43 = vpack.c.bf16 %v3735_v51, %v3728_v27  ;;  %v8238_v29 = vpack.c.bf16 %v3749_v8, %v3742_v50  ;;  %v8242_v50 = vshrl.u32 %v3632_v4, 7  ;;  %v11_v8 = vld [vmem:[%s8297_s1] sm:$0x1] }
 0x1cc   :  { %v1994_v3 = vadd.f32 %v4638_v2, %v1882_v36  ;;  %v5904_v36 = vpack.c.bf16 %v8210_v30, %v8208_v46 }
 0x1d1   :  { %v4671_v33 = vpop.f32.mrb[12].mxu1 }
 0x1d2   :  { %v4672_v31 = vpop.f32.mrb[13].mxu1 }
 0x1d3   :  { %v4673_v61 = vadd.f32 %v4672_v31, %v4671_v33 }
 0x1d5   :  { %v2226_v6 = vadd.f32 %v4673_v61, %v1994_v3 }
 0x1e8   :  { %v4706_v38 = vpop.f32.mrb[14].mxu0 }
 0x1e9   :  { %v4707_v14 = vpop.f32.mrb[15].mxu0 }
 0x1ea   :  { %v4708_v28 = vadd.f32 %v4707_v14, %v4706_v38 }
 0x1ec   :  { %v2364_v60 = vadd.f32 %v4708_v28, %v2226_v6 }
 0x1f1   :  { %v4741_v11 = vpop.f32.mrb[14].mxu1 }
 0x1f2   :  { %v4742_v10 = vpop.f32.mrb[15].mxu1 }
 0x1f3   :  { %v4743_v24 = vadd.f32 %v4742_v10, %v4741_v11 }
 0x1f5   :  { %v2472_v9 = vadd.f32 %v4743_v24, %v2364_v60 }
 0x208   :  { %v4776_v1 = vpop.f32.mrb[16].mxu0 }
 0x209   :  { %v4777_v26 = vpop.f32.mrb[17].mxu0 }
 0x20a   :  { %v4778_v57 = vadd.f32 %v4777_v26, %v4776_v1 }
 0x20c   :  { %v2640_v22 = vadd.f32 %v4778_v57, %v2472_v9 }
 0x211   :  { %v4811_v0 = vpop.f32.mrb[16].mxu1 }
 0x212   :  { %v4812_v35 = vpop.f32.mrb[17].mxu1 }
 0x213   :  { %v4813_v56 = vadd.f32 %v4812_v35, %v4811_v0 }
 0x215   :  { %v2744_v45 = vadd.f32 %v4813_v56, %v2640_v22 }
 0x228   :  { %v4846_v20 = vpop.f32.mrb[18].mxu0 }
 0x229   :  { %v4847_v19 = vpop.f32.mrb[19].mxu0 }
 0x22a   :  { %v4848_v54 = vadd.f32 %v4847_v19, %v4846_v20  ;;  %v3634_v20 = vsub.s32 0, %v8242_v50 }
 0x22c   :  { %v2856_v18 = vadd.f32 %v4848_v54, %v2744_v45 }
 0x231   :  { %v4881_v53 = vpop.f32.mrb[18].mxu1 }
 0x232   :  { %v4882_v59 = vpop.f32.mrb[19].mxu1 }
 0x233   :  { %v4883_v34 = vadd.f32 %v4882_v59, %v4881_v53 }
 0x235   :  { %v3088_v63 = vadd.f32 %v4883_v34, %v2856_v18 }
 0x248   :  { %v4916_v2 = vpop.f32.mrb[20].mxu0 }
 0x249   :  { %v4917_v3 = vpop.f32.mrb[21].mxu0 }
 0x24a   :  { %v4918_v33 = vadd.f32 %v4917_v3, %v4916_v2 }
 0x24c   :  { %v3226_v31 = vadd.f32 %v4918_v33, %v3088_v63 }
 0x251   :  { %v4951_v61 = vpop.f32.mrb[20].mxu1 }
 0x252   :  { %v4952_v6 = vpop.f32.mrb[21].mxu1 }
 0x253   :  { %v4953_v38 = vadd.f32 %v4952_v6, %v4951_v61 }
 0x255   :  { %v3334_v14 = vadd.f32 %v4953_v38, %v3226_v31 }
 0x268   :  { %v4986_v28 = vpop.f32.mrb[22].mxu0 }
 0x269   :  { %v4987_v60 = vpop.f32.mrb[23].mxu0 }
 0x26a   :  { %v4988_v11 = vadd.f32 %v4987_v60, %v4986_v28 }
 0x26c   :  { %v3502_v10 = vadd.f32 %v4988_v11, %v3334_v14 }
 0x271   :  { %v5021_v24 = vpop.f32.mrb[22].mxu1 }
 0x272   :  { %v5022_v9 = vpop.f32.mrb[23].mxu1 }
 0x273   :  { %v5023_v1 = vadd.f32 %v5022_v9, %v5021_v24 }
 0x275   :  { %v3606_v26 = vadd.f32 %v5023_v1, %v3502_v10 }
 0x277   :  { %v3610_v57 = vsel %vm3609_vm1, %v3606_v26, 0.0 }
 0x278   :  { %v3611_v22 = vrot.slane %v3610_v57, 4 }
 0x27a   :  { %v3612_v0 = vadd.f32 %v3611_v22, %v3610_v57 }
 0x27c   :  { %v3613_v35 = vrot.slane %v3612_v0, 2 }
 0x27e   :  { %v3614_v56 = vadd.f32 %v3613_v35, %v3612_v0 }
 0x280   :  { %v3615_v45 = vrot.slane %v3614_v56, 1 }
 0x282   :  { %v3616_v41 = vadd.f32 %v3615_v45, %v3614_v56 }
 0x284   :  { %v3618_v37 = vmul.f32 0.125, %v3616_v41 }
 0x286   :  { %v3619_v25 = vsub.f32 %v3606_v26, %v3618_v37 }
 0x288   :  { %v3620_v12 = vmul.f32 %v3619_v25, %v3619_v25 }
 0x28a   :  { %v3621_v16 = vsel %vm3609_vm1, %v3620_v12, 0.0 }
 0x28b   :  { %v3622_v42 = vrot.slane %v3621_v16, 4 }
 0x28d   :  { %v3623_v27 = vadd.f32 %v3622_v42, %v3621_v16  ;;  %v15_v16 = vld [vmem:[%s8297_s1 + $0x4] sm:$0x1] }
 0x28f   :  { %v3624_v51 = vrot.slane %v3623_v27, 2 }
 0x291   :  { %v3625_v52 = vadd.f32 %v3624_v51, %v3623_v27 }
 0x293   :  { %v3626_v58 = vrot.slane %v3625_v52, 1 }
 0x295   :  { %v3627_v23 = vadd.f32 %v3626_v58, %v3625_v52  ;;  %v4182_v52 = vld [vmem:[%s8297_s1 + $0x5] ss:$0 sm:$0xff] }
 0x297   :  { %v3628_v17 = vmul.f32 0.125, %v3627_v23 }
 0x299   :  { %v3629_v39 = vadd.f32 1e-05, %v3628_v17 }
 0x29b   :  { %5927 = vrsqrt.f32 %v3629_v39 }
 0x2a5   :  { %v5928_v19 = vpop.eup %5927 }
 0x2a6   :  { %v3631_v62 = vmul.f32 %v5928_v19, %v11_v8 }
 0x2a8   :  { %v3635_v49 = vrot.slane %v3631_v62, %v3634_v20 }
 0x2aa   :  { %v3636_v54 = vmul.f32 %v3635_v49, %v3619_v25 }
 0x2ac   :  { %v3641_v5 = vadd.f32 %v4180_v13, %v3636_v54 }
 0x2ae   :  { %v3642_v48 = vmax.f32 %v3641_v5, 0.0 }
 0x2b0   :  { %v3644_v18 = vsel %vm3609_vm1, %v3642_v48, 0 }
 0x2b1   :  { %v3715_v40 = vand.u32 4294901760, %v3644_v18 }
 0x2b3   :  { %v3716_v53 = vsub.f32 %v3644_v18, %v3715_v40  ;;  %5074 = vmatmul.mubr.f32.vlgmr.msra.gmra.mrb[24].mxu1 %v3715_v40 }
 0x2b4   :  { %5908 = vmatpush3.bf16.msra.mxu1 %v8219_v15  ;;  %5095 = vmatprep.mubr.msk.f32.mxu1 %vm5936_vm0, %v5937_v21 }
 0x2b5   :  { %5909 = vmatprep.subr.bf16.mxu1 %v5935_v32  ;;  %v3717_v59 = vand.u32 4294901760, %v3716_v53 }
 0x2b7   :  { %v3718_v34 = vsub.f32 %v3716_v53, %v3717_v59 }
 0x2b8   :  { %5911 = vmatpush3.bf16.msra.mxu1 %v8228_v47 }
 0x2b9   :  { %5918 = vmatprep.subr.bf16.mxu1 %v5935_v32  ;;  %v3719_v63 = vand.u32 4294901760, %v3718_v34 }
 0x2bb   :  { %5096 = vmatmul.mubr.f32.vlgmr.msra.gmra.mrb[26].mxu1 %v3717_v59  ;;  %5063 = vmatmul.mubr.f32.vlgmr.msra.gmra.mrb[24].mxu0 %v3719_v63 }
 0x2bc   :  { %5902 = vmatpush3.bf16.msra.mxu0 %v5901_v55  ;;  %5920 = vmatpush3.bf16.msra.mxu1 %v8219_v15 }
 0x2bd   :  { %5903 = vmatprep.subr.bf16.mxu0 %v5935_v32  ;;  %5921 = vmatprep.subr.bf16.mxu1 %v5935_v32 }
 0x2be   :  { %5084 = vmatprep.mubr.msk.f32.mxu0 %vm5936_vm0, %v5937_v21  ;;  %5117 = vmatprep.mubr.msk.f32.mxu1 %vm5936_vm0, %v5937_v21 }
 0x2c0   :  { %5905 = vmatpush3.bf16.msra.mxu0 %v5904_v36  ;;  %5923 = vmatpush3.bf16.msra.mxu1 %v8228_v47 }
 0x2c1   :  { %5912 = vmatprep.subr.bf16.mxu0 %v5935_v32 }
 0x2c3   :  { %5085 = vmatmul.mubr.f32.vlgmr.msra.gmra.mrb[26].mxu0 %v3716_v53  ;;  %5118 = vmatmul.mubr.f32.vlgmr.msra.gmra.mrb[28].mxu1 %v3715_v40 }
 0x2c4   :  { %5914 = vmatpush3.bf16.msra.mxu0 %v8236_v43  ;;  %5106 = vmatprep.mubr.msk.f32.mxu0 %vm5936_vm0, %v5937_v21 }
 0x2c5   :  { %5915 = vmatprep.subr.bf16.mxu0 %v5935_v32  ;;  %v4181_v32 = vld [vmem:[%s8297_s1 + $0x3] ss:$0 sm:$0xff] }
 0x2c8   :  { %5917 = vmatpush3.bf16.msra.mxu0 %v8238_v29 }
 0x2cb   :  { %5107 = vmatmul.mubr.f32.vlgmr.msra.gmra.mrb[28].mxu0 %v3715_v40 }
 0x386   :  { %v3812_v7 = vpop.f32.mrb[24].mxu1 }
 0x387   :  { %v5075_v44 = vpop.f32.mrb[25].mxu1 }
 0x38e   :  { %v3969_v46 = vpop.f32.mrb[26].mxu1  ;;  %v3721_v30 = vpop.f32.mrb[24].mxu0 }
 0x38f   :  { %v3813_v15 = vadd.f32 %v3812_v7, %v3721_v30  ;;  %v5097_v47 = vpop.f32.mrb[27].mxu1  ;;  %v5064_v55 = vpop.f32.mrb[25].mxu0 }
 0x396   :  { %v3892_v36 = vpop.f32.mrb[26].mxu0  ;;  %v4127_v2 = vpop.f32.mrb[28].mxu1 }
 0x397   :  { %v3893_v3 = vadd.f32 %v3892_v36, %v3813_v15  ;;  %v5086_v33 = vpop.f32.mrb[27].mxu0  ;;  %v5119_v43 = vpop.f32.mrb[29].mxu1 }
 0x399   :  { %v3970_v31 = vadd.f32 %v3969_v46, %v3893_v3 }
 0x39e   :  { %v4052_v61 = vpop.f32.mrb[28].mxu0 }
 0x39f   :  { %v4053_v21 = vadd.f32 %v4052_v61, %v3970_v31  ;;  %v5108_v6 = vpop.f32.mrb[29].mxu0 }
 0x3a1   :  { %v4128_v29 = vadd.f32 %v4127_v2, %v4053_v21 }
 0x3a3   :  { %v4135_v38 = vadd.f32 %v4181_v32, %v4128_v29 }
 0x3a5   :  { %v4137_v14 = vsel %vm4136_vm2, %v4135_v38, 0.0 }
 0x3a6   :  { %v4138_v28 = vrot.slane %v4137_v14, 4 }
 0x3a8   :  { %v4139_v60 = vadd.f32 %v4138_v28, %v4137_v14 }
 0x3aa   :  { %v4140_v11 = vrot.slane %v4139_v60, 2 }
 0x3ac   :  { %v4141_v10 = vadd.f32 %v4140_v11, %v4139_v60 }
 0x3ae   :  { %v4142_v24 = vrot.slane %v4141_v10, 1 }
 0x3b0   :  { %v4143_v9 = vadd.f32 %v4142_v24, %v4141_v10 }
 0x3b2   :  { %v4144_v1 = vmul.f32 0.125, %v4143_v9 }
 0x3b4   :  { %v4145_v26 = vsub.f32 %v4135_v38, %v4144_v1 }
 0x3b6   :  { %v4146_v57 = vmul.f32 %v4145_v26, %v4145_v26 }
 0x3b8   :  { %v4147_v22 = vsel %vm4136_vm2, %v4146_v57, 0.0 }
 0x3b9   :  { %v4148_v0 = vrot.slane %v4147_v22, 4 }
 0x3bb   :  { %v4149_v35 = vadd.f32 %v4148_v0, %v4147_v22 }
 0x3bd   :  { %v4150_v56 = vrot.slane %v4149_v35, 2 }
 0x3bf   :  { %v4151_v45 = vadd.f32 %v4150_v56, %v4149_v35 }
 0x3c1   :  { %v4152_v41 = vrot.slane %v4151_v45, 1 }
 0x3c3   :  { %v4153_v37 = vadd.f32 %v4152_v41, %v4151_v45 }
 0x3c5   :  { %v4154_v25 = vmul.f32 0.125, %v4153_v37 }
 0x3c7   :  { %v4155_v12 = vadd.f32 1e-05, %v4154_v25 }
 0x3c9   :  { %5929 = vrsqrt.f32 %v4155_v12 }
 0x3d3   :  { %v5930_v42 = vpop.eup %5929 }
 0x3d4   :  { %v4157_v27 = vmul.f32 %v5930_v42, %v15_v16 }
 0x3d6   :  { %v4161_v51 = vrot.slane %v4157_v27, %v3634_v20 }
 0x3d8   :  { %v4162_v58 = vmul.f32 %v4161_v51, %v4145_v26 }
 0x3da   :  { %v4167_v23 = vadd.f32 %v4182_v52, %v4162_v58 }
 0x3dc   :  { %v4183_v17 = vmul.f32 -1.442695, %v4167_v23 }
 0x3de   :  { %5931 = vpow2.f32 %v4183_v17 }
 0x3e8   :  { %v5932_v39 = vpop.eup %5931 }
 0x3e9   :  { %v4171_v4 = vadd.f32 1.0, %v5932_v39 }
 0x3eb   :  { %5933 = vrcp.f32 %v4171_v4 }
 0x3f5   :  { %v5934_v8 = vpop.eup %5933 }
 0x3f6   :  { %4174 = vst.msk [vmem:[%s8299_s2] sm:$0xff] %vm4136_vm2, %v5934_v8 }

</bundles_post_ra>
